<compile_context>
chip_gen: v7x
topology: tpu7x:2x2x1
jax: 0.10.0
libtpu: 0.0.40
codegen_flags: <defaults>
</compile_context>

<pallas_src>
import functools

import jax
import jax.numpy as jnp
from jax.experimental import pallas as pl
from jax.experimental.pallas import tpu as pltpu


# ------------------------------ in-kernel helpers ----------------------------
def _elu(x):
    # ELU with an expm1-accurate negative branch:
    #   expm1(x) = tanh(x/2) * (exp(x) + 1)   (exact identity, no cancellation
    # for small |x|; exp/tanh are both EUP ops, so this is effectively free).
    em1 = jnp.tanh(0.5 * x) * (jnp.exp(x) + 1.0)
    return jnp.where(x > 0.0, x, em1)


def _gat_layer(x, w_ext, bias, neg_mask, acc_ref, heads, ch):
    """Dense-adjacency GATConv (concat=True) + ELU.

    x:        (N, Fin)            f32
    w_ext:    (Fin, H*C + 2H)     [ W | W@att_dst | W@att_src ]
    bias:     (1, H*C)
    neg_mask: (N, N)              additive mask: 0 on edges, -1e30 otherwise
    acc_ref:  VMEM scratch (N, >= H*C) for lane-dense head-concat writes
    returns:  (N, H*C)
    """
    H, C = heads, ch

    # One wide MXU push gives both the per-head features and both score sets.
    proj = jnp.dot(x, w_ext, preferred_element_type=jnp.float32)   # (N, H*C+2H)
    hh_all = proj[:, :H * C]                                       # (N, H*C)

    # Single tiny transpose gives the (2H, N) "row" layout for all heads.
    scores_t = proj[:, H * C:H * C + 2 * H].T                      # (2H, N)
    a_dst = scores_t[:H][:, :, None]                               # (H, N, 1)
    a_src = scores_t[H:][:, None, :]                               # (H, 1, N)

    # Batched-over-heads masked softmax.
    e = a_dst + a_src                                              # (H, N, N)
    e = jnp.where(e > 0.0, e, 0.2 * e)                             # LeakyReLU(0.2)
    e = e + neg_mask[None, :, :]                                   # mask non-edges
    e = e - jnp.max(e, axis=-1, keepdims=True)
    p = jnp.exp(e)                    # masked logits underflow to exactly 0
    denom = jnp.sum(p, axis=-1, keepdims=True)
    # Safe (row-sum > 0) because self-loops are always added in the glue code.
    alpha = p * pl.reciprocal(denom, approx=True)                  # EUP, not VALU

    # Per-head aggregation, written lane-dense at static column offsets
    # (H small -> unrolled at trace time; einsum would lower to the same dots).
    for h in range(H):
        acc_ref[:, h * C:(h + 1) * C] = jnp.dot(
            alpha[h], hh_all[:, h * C:(h + 1) * C],
            preferred_element_type=jnp.float32)

    out = acc_ref[:, :H * C] + bias
    return _elu(out)


# ------------------------------- fused kernel --------------------------------
def gatnet_kernel(x_ref, negmask_ref, p_ref, out_ref, acc_ref, *,
                  layout, heads, hidden):
    def load(name):                       # static VMEM slice of the param blob
        r0, r, c = layout[name]
        return p_ref[pl.ds(r0, r), pl.ds(0, c)]

    x0 = x_ref[...]
    neg = negmask_ref[...].astype(jnp.float32)     # bf16 in HBM, f32 math

    x1 = _gat_layer(x0, load("w1"), load("b1"), neg, acc_ref, heads, hidden)
    x2 = _gat_layer(x1, load("w2"), load("b2"), neg, acc_ref, heads, hidden)
    x3 = _gat_layer(x2, load("w3"), load("b3"), neg, acc_ref, 1, hidden)

    # lin(x3) + residual(x0) fused into ONE matmul on the lane-concat [x3 | x0]
    xf = jnp.concatenate([x3, x0], axis=-1)                        # (N, C+Fin)
    out_ref[...] = (jnp.dot(xf, load("wlr"), preferred_element_type=jnp.float32)
                    + load("blr"))


def gat_net(x, neg_mask, blob, *, layout, heads, hidden, out_channels):
    N = x.shape[0]
    kernel = functools.partial(gatnet_kernel, layout=layout,
                               heads=heads, hidden=hidden)
    vmem = pl.BlockSpec(memory_space=pltpu.MemorySpace.VMEM)
    return pl.pallas_call(
        kernel,
        out_shape=jax.ShapeDtypeStruct((N, out_channels), jnp.float32),
        in_specs=[vmem, vmem, vmem],
        out_specs=vmem,
        scratch_shapes=[pltpu.VMEM((N, heads * hidden), jnp.float32)],
    )(x, neg_mask, blob)


# ---------------------------------- params ------------------------------------
def init_params(key, in_ch, hidden, out_ch, heads):
    ks = jax.random.split(key, 16)
    s = 0.1

    def gat(kw, ka_s, ka_d, kb, fin, c, h):
        w = s * jax.random.normal(kw, (fin, h * c), jnp.float32)
        att_src = s * jax.random.normal(ka_s, (h, c), jnp.float32)
        att_dst = s * jax.random.normal(ka_d, (h, c), jnp.float32)
        bias = s * jax.random.normal(kb, (1, h * c), jnp.float32)
        # Fold the attention projections into extra columns of W:
        #   (xW_h) . att_dst_h == x . (W_h att_dst_h)   (same for src)
        w_r = w.reshape(fin, h, c)
        w_ad = jnp.einsum("fhc,hc->fh", w_r, att_dst)          # (fin, h)
        w_as = jnp.einsum("fhc,hc->fh", w_r, att_src)          # (fin, h)
        w_ext = jnp.concatenate([w, w_ad, w_as], axis=1)       # (fin, h*c + 2h)
        return w_ext, bias

    w1, b1 = gat(ks[0], ks[1], ks[2], ks[3], in_ch, hidden, heads)
    w2, b2 = gat(ks[4], ks[5], ks[6], ks[7], hidden * heads, hidden, heads)
    w3, b3 = gat(ks[8], ks[9], ks[10], ks[11], hidden * heads, hidden, 1)

    w_lin = s * jax.random.normal(ks[12], (hidden, out_ch), jnp.float32)
    b_lin = s * jax.random.normal(ks[13], (1, out_ch), jnp.float32)
    w_res = s * jax.random.normal(ks[14], (in_ch, out_ch), jnp.float32)
    b_res = s * jax.random.normal(ks[15], (1, out_ch), jnp.float32)
    # Fuse lin + residual: [x3 | x0] @ [W_lin ; W_res] + (b_lin + b_res)
    wlr = jnp.concatenate([w_lin, w_res], axis=0)              # (hidden+in, out)
    blr = b_lin + b_res

    return {"w1": w1, "b1": b1, "w2": w2, "b2": b2, "w3": w3, "b3": b3,
            "wlr": wlr, "blr": blr}


def pack_params(params):
    """Pack all parameter tensors into one (rows, cols) f32 blob.

    Every block starts on an 8-row (sublane-tile) boundary so in-kernel static
    slices never straddle a tile origin. Returns (blob, layout) where
    layout[name] = (row_offset, nrows, ncols).
    """
    order = ["w1", "b1", "w2", "b2", "w3", "b3", "wlr", "blr"]
    cols = max(params[n].shape[1] for n in order)
    layout, row = {}, 0
    for n in order:
        r, c = params[n].shape
        layout[n] = (row, r, c)
        row += (r + 7) // 8 * 8
    blob = jnp.zeros((row, cols), jnp.float32)
    for n in order:
        r0, r, c = layout[n]
        blob = blob.at[r0:r0 + r, :c].set(params[n])
    return blob, layout


# ----------------------------------- main --------------------------------------
if __name__ == "__main__":
    key = jax.random.PRNGKey(0)
    N = 16
    in_channels, hidden, out_channels, heads = 8, 8, 4, 4
    num_edges = 40

    kx, ke1, ke2, kp = jax.random.split(key, 4)
    x = jax.random.normal(kx, (N, in_channels), jnp.float32)

    src = jax.random.randint(ke1, (num_edges,), 0, N)
    dst = jax.random.randint(ke2, (num_edges,), 0, N)
    edge_index = jnp.stack([src, dst])  # (2, E): row 0 = source, row 1 = target

    # Dense adjacency adj[dst, src] = 1 ; add self-loops (PyG GATConv default).
    # Self-loops also guarantee every softmax row has at least one unmasked
    # entry, which the in-kernel masked-softmax relies on. The additive mask
    # is stored in bf16 (the only O(N^2) operand); -1e30 is exactly in range.
    adj = jnp.zeros((N, N), jnp.float32).at[edge_index[1], edge_index[0]].set(1.0)
    adj = adj.at[jnp.arange(N), jnp.arange(N)].set(1.0)
    neg_mask = jnp.where(adj > 0, 0.0, -1e30).astype(jnp.bfloat16)

    params = init_params(kp, in_channels, hidden, out_channels, heads)
    blob, layout = pack_params(params)

    y = gat_net(x, neg_mask, blob, layout=layout, heads=heads, hidden=hidden,
                out_channels=out_channels)
    jax.block_until_ready(y)
    assert y.shape == (N, out_channels)
    print("KERNEL_OK")
</pallas_src>

<mosaic_0001>
module attributes {stable_mosaic.version = 11 : i64} {
  func.func @gatnet_kernel(%arg0: memref<16x8xf32, #tpu.memory_space<vmem>>, %arg1: memref<16x16xbf16, #tpu.memory_space<vmem>>, %arg2: memref<120x40xf32, #tpu.memory_space<vmem>>, %arg3: memref<16x4xf32, #tpu.memory_space<vmem>>, %arg4: memref<16x32xf32, #tpu.memory_space<vmem>>) attributes {dimension_semantics = [], scalar_prefetch = 0 : i64, scratch_operands = 1 : i64, tpu.core_type = #tpu.core_type<tc>} {
    %c0 = arith.constant 0 : index
    %c0_0 = arith.constant 0 : index
    %0 = vector.load %arg0[%c0, %c0_0] : memref<16x8xf32, #tpu.memory_space<vmem>>, vector<16x8xf32>
    %c0_1 = arith.constant 0 : index
    %c0_2 = arith.constant 0 : index
    %1 = vector.load %arg1[%c0_1, %c0_2] : memref<16x16xbf16, #tpu.memory_space<vmem>>, vector<16x16xbf16>
    %2 = arith.extf %1 : vector<16x16xbf16> to vector<16x16xf32>
    %c0_3 = arith.constant 0 : index
    %c0_4 = arith.constant 0 : index
    %3 = vector.load %arg2[%c0_3, %c0_4] : memref<120x40xf32, #tpu.memory_space<vmem>>, vector<8x40xf32>
    %c8 = arith.constant 8 : index
    %c0_5 = arith.constant 0 : index
    %4 = vector.load %arg2[%c8, %c0_5] : memref<120x40xf32, #tpu.memory_space<vmem>>, vector<1x32xf32>
    %cst = arith.constant dense<0.000000e+00> : vector<16x40xf32>
    %5 = tpu.matmul %0, %3, %cst {dimension_numbers = #tpu.dot_dimension_numbers<[1], [0], [0], [1], [0, 0, 1, 1], [], []>} : vector<16x8xf32>, vector<8x40xf32>, vector<16x40xf32> -> vector<16x40xf32>
    %6 = vector.extract_strided_slice %5 {offsets = [0, 0], sizes = [16, 32], strides = [1, 1]} : vector<16x40xf32> to vector<16x32xf32>
    %7 = vector.extract_strided_slice %5 {offsets = [0, 32], sizes = [16, 8], strides = [1, 1]} : vector<16x40xf32> to vector<16x8xf32>
    %8 = tpu.transpose %7, [1, 0] : vector<16x8xf32> -> vector<8x16xf32>
    %9 = vector.extract_strided_slice %8 {offsets = [0, 0], sizes = [4, 16], strides = [1, 1]} : vector<8x16xf32> to vector<4x16xf32>
    %10 = vector.shape_cast %9 : vector<4x16xf32> to vector<4x16x1xf32>
    %11 = vector.extract_strided_slice %8 {offsets = [4, 0], sizes = [4, 16], strides = [1, 1]} : vector<8x16xf32> to vector<4x16xf32>
    %12 = vector.shape_cast %11 : vector<4x16xf32> to vector<4x1x16xf32>
    %13 = vector.broadcast %10 : vector<4x16x1xf32> to vector<4x16x16xf32>
    %14 = vector.broadcast %12 : vector<4x1x16xf32> to vector<4x16x16xf32>
    %15 = arith.addf %13, %14 : vector<4x16x16xf32>
    %cst_6 = arith.constant 0.000000e+00 : f32
    %16 = vector.broadcast %cst_6 : f32 to vector<4x16x16xf32>
    %17 = arith.cmpf ogt, %15, %16 : vector<4x16x16xf32>
    %cst_7 = arith.constant 2.000000e-01 : f32
    %18 = vector.broadcast %cst_7 : f32 to vector<4x16x16xf32>
    %19 = arith.mulf %18, %15 : vector<4x16x16xf32>
    %20 = arith.select %17, %15, %19 : vector<4x16x16xi1>, vector<4x16x16xf32>
    %21 = vector.shape_cast %2 : vector<16x16xf32> to vector<1x16x16xf32>
    %22 = vector.broadcast %21 : vector<1x16x16xf32> to vector<4x16x16xf32>
    %23 = arith.addf %20, %22 : vector<4x16x16xf32>
    %cst_8 = arith.constant dense<0xFF800000> : vector<4x16xf32>
    %24 = vector.multi_reduction <maximumf>, %23, %cst_8 [2] : vector<4x16x16xf32> to vector<4x16xf32>
    %25 = vector.shape_cast %24 : vector<4x16xf32> to vector<4x16x1xf32>
    %26 = vector.broadcast %25 : vector<4x16x1xf32> to vector<4x16x16xf32>
    %27 = arith.subf %23, %26 : vector<4x16x16xf32>
    %28 = math.exp %27 : vector<4x16x16xf32>
    %cst_9 = arith.constant dense<0.000000e+00> : vector<4x16xf32>
    %29 = vector.multi_reduction <add>, %28, %cst_9 [2] : vector<4x16x16xf32> to vector<4x16xf32>
    %30 = vector.shape_cast %29 : vector<4x16xf32> to vector<4x16x1xf32>
    %31 = tpu.reciprocal %30 {approx = true} : vector<4x16x1xf32> -> vector<4x16x1xf32>
    %32 = vector.broadcast %31 : vector<4x16x1xf32> to vector<4x16x16xf32>
    %33 = arith.mulf %28, %32 : vector<4x16x16xf32>
    %34 = vector.extract_strided_slice %33 {offsets = [0, 0, 0], sizes = [1, 16, 16], strides = [1, 1, 1]} : vector<4x16x16xf32> to vector<1x16x16xf32>
    %35 = vector.shape_cast %34 : vector<1x16x16xf32> to vector<16x16xf32>
    %36 = vector.extract_strided_slice %6 {offsets = [0, 0], sizes = [16, 8], strides = [1, 1]} : vector<16x32xf32> to vector<16x8xf32>
    %cst_10 = arith.constant dense<0.000000e+00> : vector<16x8xf32>
    %37 = tpu.matmul %35, %36, %cst_10 {dimension_numbers = #tpu.dot_dimension_numbers<[1], [0], [0], [1], [0, 0, 1, 1], [], []>} : vector<16x16xf32>, vector<16x8xf32>, vector<16x8xf32> -> vector<16x8xf32>
    %c0_11 = arith.constant 0 : index
    %c0_12 = arith.constant 0 : index
    %38 = vector.load %arg4[%c0_11, %c0_12] : memref<16x32xf32, #tpu.memory_space<vmem>>, vector<16x8xf32>
    tpu.vector_store %arg4[%c0_11, %c0_12], %37 {strides = array<i32>} : memref<16x32xf32, #tpu.memory_space<vmem>>, vector<16x8xf32>,
    %39 = vector.extract_strided_slice %33 {offsets = [1, 0, 0], sizes = [1, 16, 16], strides = [1, 1, 1]} : vector<4x16x16xf32> to vector<1x16x16xf32>
    %40 = vector.shape_cast %39 : vector<1x16x16xf32> to vector<16x16xf32>
    %41 = vector.extract_strided_slice %6 {offsets = [0, 8], sizes = [16, 8], strides = [1, 1]} : vector<16x32xf32> to vector<16x8xf32>
    %cst_13 = arith.constant dense<0.000000e+00> : vector<16x8xf32>
    %42 = tpu.matmul %40, %41, %cst_13 {dimension_numbers = #tpu.dot_dimension_numbers<[1], [0], [0], [1], [0, 0, 1, 1], [], []>} : vector<16x16xf32>, vector<16x8xf32>, vector<16x8xf32> -> vector<16x8xf32>
    %c0_14 = arith.constant 0 : index
    %c8_15 = arith.constant 8 : index
    %43 = vector.load %arg4[%c0_14, %c8_15] : memref<16x32xf32, #tpu.memory_space<vmem>>, vector<16x8xf32>
    tpu.vector_store %arg4[%c0_14, %c8_15], %42 {strides = array<i32>} : memref<16x32xf32, #tpu.memory_space<vmem>>, vector<16x8xf32>,
    %44 = vector.extract_strided_slice %33 {offsets = [2, 0, 0], sizes = [1, 16, 16], strides = [1, 1, 1]} : vector<4x16x16xf32> to vector<1x16x16xf32>
    %45 = vector.shape_cast %44 : vector<1x16x16xf32> to vector<16x16xf32>
    %46 = vector.extract_strided_slice %6 {offsets = [0, 16], sizes = [16, 8], strides = [1, 1]} : vector<16x32xf32> to vector<16x8xf32>
    %cst_16 = arith.constant dense<0.000000e+00> : vector<16x8xf32>
    %47 = tpu.matmul %45, %46, %cst_16 {dimension_numbers = #tpu.dot_dimension_numbers<[1], [0], [0], [1], [0, 0, 1, 1], [], []>} : vector<16x16xf32>, vector<16x8xf32>, vector<16x8xf32> -> vector<16x8xf32>
    %c0_17 = arith.constant 0 : index
    %c16 = arith.constant 16 : index
    %48 = vector.load %arg4[%c0_17, %c16] : memref<16x32xf32, #tpu.memory_space<vmem>>, vector<16x8xf32>
    tpu.vector_store %arg4[%c0_17, %c16], %47 {strides = array<i32>} : memref<16x32xf32, #tpu.memory_space<vmem>>, vector<16x8xf32>,
    %49 = vector.extract_strided_slice %33 {offsets = [3, 0, 0], sizes = [1, 16, 16], strides = [1, 1, 1]} : vector<4x16x16xf32> to vector<1x16x16xf32>
    %50 = vector.shape_cast %49 : vector<1x16x16xf32> to vector<16x16xf32>
    %51 = vector.extract_strided_slice %6 {offsets = [0, 24], sizes = [16, 8], strides = [1, 1]} : vector<16x32xf32> to vector<16x8xf32>
    %cst_18 = arith.constant dense<0.000000e+00> : vector<16x8xf32>
    %52 = tpu.matmul %50, %51, %cst_18 {dimension_numbers = #tpu.dot_dimension_numbers<[1], [0], [0], [1], [0, 0, 1, 1], [], []>} : vector<16x16xf32>, vector<16x8xf32>, vector<16x8xf32> -> vector<16x8xf32>
    %c0_19 = arith.constant 0 : index
    %c24 = arith.constant 24 : index
    %53 = vector.load %arg4[%c0_19, %c24] : memref<16x32xf32, #tpu.memory_space<vmem>>, vector<16x8xf32>
    tpu.vector_store %arg4[%c0_19, %c24], %52 {strides = array<i32>} : memref<16x32xf32, #tpu.memory_space<vmem>>, vector<16x8xf32>,
    %c0_20 = arith.constant 0 : index
    %c0_21 = arith.constant 0 : index
    %54 = vector.load %arg4[%c0_20, %c0_21] : memref<16x32xf32, #tpu.memory_space<vmem>>, vector<16x32xf32>
    %55 = vector.broadcast %4 : vector<1x32xf32> to vector<16x32xf32>
    %56 = arith.addf %54, %55 : vector<16x32xf32>
    %cst_22 = arith.constant 5.000000e-01 : f32
    %57 = vector.broadcast %cst_22 : f32 to vector<16x32xf32>
    %58 = arith.mulf %57, %56 : vector<16x32xf32>
    %59 = math.tanh %58 : vector<16x32xf32>
    %60 = math.exp %56 : vector<16x32xf32>
    %cst_23 = arith.constant 1.000000e+00 : f32
    %61 = vector.broadcast %cst_23 : f32 to vector<16x32xf32>
    %62 = arith.addf %60, %61 : vector<16x32xf32>
    %63 = arith.mulf %59, %62 : vector<16x32xf32>
    %cst_24 = arith.constant 0.000000e+00 : f32
    %64 = vector.broadcast %cst_24 : f32 to vector<16x32xf32>
    %65 = arith.cmpf ogt, %56, %64 : vector<16x32xf32>
    %66 = arith.select %65, %56, %63 : vector<16x32xi1>, vector<16x32xf32>
    %c16_25 = arith.constant 16 : index
    %c0_26 = arith.constant 0 : index
    %67 = vector.load %arg2[%c16_25, %c0_26] : memref<120x40xf32, #tpu.memory_space<vmem>>, vector<32x40xf32>
    %c48 = arith.constant 48 : index
    %c0_27 = arith.constant 0 : index
    %68 = vector.load %arg2[%c48, %c0_27] : memref<120x40xf32, #tpu.memory_space<vmem>>, vector<1x32xf32>
    %cst_28 = arith.constant dense<0.000000e+00> : vector<16x40xf32>
    %69 = tpu.matmul %66, %67, %cst_28 {dimension_numbers = #tpu.dot_dimension_numbers<[1], [0], [0], [1], [0, 0, 1, 1], [], []>} : vector<16x32xf32>, vector<32x40xf32>, vector<16x40xf32> -> vector<16x40xf32>
    %70 = vector.extract_strided_slice %69 {offsets = [0, 0], sizes = [16, 32], strides = [1, 1]} : vector<16x40xf32> to vector<16x32xf32>
    %71 = vector.extract_strided_slice %69 {offsets = [0, 32], sizes = [16, 8], strides = [1, 1]} : vector<16x40xf32> to vector<16x8xf32>
    %72 = tpu.transpose %71, [1, 0] : vector<16x8xf32> -> vector<8x16xf32>
    %73 = vector.extract_strided_slice %72 {offsets = [0, 0], sizes = [4, 16], strides = [1, 1]} : vector<8x16xf32> to vector<4x16xf32>
    %74 = vector.shape_cast %73 : vector<4x16xf32> to vector<4x16x1xf32>
    %75 = vector.extract_strided_slice %72 {offsets = [4, 0], sizes = [4, 16], strides = [1, 1]} : vector<8x16xf32> to vector<4x16xf32>
    %76 = vector.shape_cast %75 : vector<4x16xf32> to vector<4x1x16xf32>
    %77 = vector.broadcast %74 : vector<4x16x1xf32> to vector<4x16x16xf32>
    %78 = vector.broadcast %76 : vector<4x1x16xf32> to vector<4x16x16xf32>
    %79 = arith.addf %77, %78 : vector<4x16x16xf32>
    %cst_29 = arith.constant 0.000000e+00 : f32
    %80 = vector.broadcast %cst_29 : f32 to vector<4x16x16xf32>
    %81 = arith.cmpf ogt, %79, %80 : vector<4x16x16xf32>
    %cst_30 = arith.constant 2.000000e-01 : f32
    %82 = vector.broadcast %cst_30 : f32 to vector<4x16x16xf32>
    %83 = arith.mulf %82, %79 : vector<4x16x16xf32>
    %84 = arith.select %81, %79, %83 : vector<4x16x16xi1>, vector<4x16x16xf32>
    %85 = vector.shape_cast %2 : vector<16x16xf32> to vector<1x16x16xf32>
    %86 = vector.broadcast %85 : vector<1x16x16xf32> to vector<4x16x16xf32>
    %87 = arith.addf %84, %86 : vector<4x16x16xf32>
    %cst_31 = arith.constant dense<0xFF800000> : vector<4x16xf32>
    %88 = vector.multi_reduction <maximumf>, %87, %cst_31 [2] : vector<4x16x16xf32> to vector<4x16xf32>
    %89 = vector.shape_cast %88 : vector<4x16xf32> to vector<4x16x1xf32>
    %90 = vector.broadcast %89 : vector<4x16x1xf32> to vector<4x16x16xf32>
    %91 = arith.subf %87, %90 : vector<4x16x16xf32>
    %92 = math.exp %91 : vector<4x16x16xf32>
    %cst_32 = arith.constant dense<0.000000e+00> : vector<4x16xf32>
    %93 = vector.multi_reduction <add>, %92, %cst_32 [2] : vector<4x16x16xf32> to vector<4x16xf32>
    %94 = vector.shape_cast %93 : vector<4x16xf32> to vector<4x16x1xf32>
    %95 = tpu.reciprocal %94 {approx = true} : vector<4x16x1xf32> -> vector<4x16x1xf32>
    %96 = vector.broadcast %95 : vector<4x16x1xf32> to vector<4x16x16xf32>
    %97 = arith.mulf %92, %96 : vector<4x16x16xf32>
    %98 = vector.extract_strided_slice %97 {offsets = [0, 0, 0], sizes = [1, 16, 16], strides = [1, 1, 1]} : vector<4x16x16xf32> to vector<1x16x16xf32>
    %99 = vector.shape_cast %98 : vector<1x16x16xf32> to vector<16x16xf32>
    %100 = vector.extract_strided_slice %70 {offsets = [0, 0], sizes = [16, 8], strides = [1, 1]} : vector<16x32xf32> to vector<16x8xf32>
    %cst_33 = arith.constant dense<0.000000e+00> : vector<16x8xf32>
    %101 = tpu.matmul %99, %100, %cst_33 {dimension_numbers = #tpu.dot_dimension_numbers<[1], [0], [0], [1], [0, 0, 1, 1], [], []>} : vector<16x16xf32>, vector<16x8xf32>, vector<16x8xf32> -> vector<16x8xf32>
    %c0_34 = arith.constant 0 : index
    %c0_35 = arith.constant 0 : index
    %102 = vector.load %arg4[%c0_34, %c0_35] : memref<16x32xf32, #tpu.memory_space<vmem>>, vector<16x8xf32>
    tpu.vector_store %arg4[%c0_34, %c0_35], %101 {strides = array<i32>} : memref<16x32xf32, #tpu.memory_space<vmem>>, vector<16x8xf32>,
    %103 = vector.extract_strided_slice %97 {offsets = [1, 0, 0], sizes = [1, 16, 16], strides = [1, 1, 1]} : vector<4x16x16xf32> to vector<1x16x16xf32>
    %104 = vector.shape_cast %103 : vector<1x16x16xf32> to vector<16x16xf32>
    %105 = vector.extract_strided_slice %70 {offsets = [0, 8], sizes = [16, 8], strides = [1, 1]} : vector<16x32xf32> to vector<16x8xf32>
    %cst_36 = arith.constant dense<0.000000e+00> : vector<16x8xf32>
    %106 = tpu.matmul %104, %105, %cst_36 {dimension_numbers = #tpu.dot_dimension_numbers<[1], [0], [0], [1], [0, 0, 1, 1], [], []>} : vector<16x16xf32>, vector<16x8xf32>, vector<16x8xf32> -> vector<16x8xf32>
    %c0_37 = arith.constant 0 : index
    %c8_38 = arith.constant 8 : index
    %107 = vector.load %arg4[%c0_37, %c8_38] : memref<16x32xf32, #tpu.memory_space<vmem>>, vector<16x8xf32>
    tpu.vector_store %arg4[%c0_37, %c8_38], %106 {strides = array<i32>} : memref<16x32xf32, #tpu.memory_space<vmem>>, vector<16x8xf32>,
    %108 = vector.extract_strided_slice %97 {offsets = [2, 0, 0], sizes = [1, 16, 16], strides = [1, 1, 1]} : vector<4x16x16xf32> to vector<1x16x16xf32>
    %109 = vector.shape_cast %108 : vector<1x16x16xf32> to vector<16x16xf32>
    %110 = vector.extract_strided_slice %70 {offsets = [0, 16], sizes = [16, 8], strides = [1, 1]} : vector<16x32xf32> to vector<16x8xf32>
    %cst_39 = arith.constant dense<0.000000e+00> : vector<16x8xf32>
    %111 = tpu.matmul %109, %110, %cst_39 {dimension_numbers = #tpu.dot_dimension_numbers<[1], [0], [0], [1], [0, 0, 1, 1], [], []>} : vector<16x16xf32>, vector<16x8xf32>, vector<16x8xf32> -> vector<16x8xf32>
    %c0_40 = arith.constant 0 : index
    %c16_41 = arith.constant 16 : index
    %112 = vector.load %arg4[%c0_40, %c16_41] : memref<16x32xf32, #tpu.memory_space<vmem>>, vector<16x8xf32>
    tpu.vector_store %arg4[%c0_40, %c16_41], %111 {strides = array<i32>} : memref<16x32xf32, #tpu.memory_space<vmem>>, vector<16x8xf32>,
    %113 = vector.extract_strided_slice %97 {offsets = [3, 0, 0], sizes = [1, 16, 16], strides = [1, 1, 1]} : vector<4x16x16xf32> to vector<1x16x16xf32>
    %114 = vector.shape_cast %113 : vector<1x16x16xf32> to vector<16x16xf32>
    %115 = vector.extract_strided_slice %70 {offsets = [0, 24], sizes = [16, 8], strides = [1, 1]} : vector<16x32xf32> to vector<16x8xf32>
    %cst_42 = arith.constant dense<0.000000e+00> : vector<16x8xf32>
    %116 = tpu.matmul %114, %115, %cst_42 {dimension_numbers = #tpu.dot_dimension_numbers<[1], [0], [0], [1], [0, 0, 1, 1], [], []>} : vector<16x16xf32>, vector<16x8xf32>, vector<16x8xf32> -> vector<16x8xf32>
    %c0_43 = arith.constant 0 : index
    %c24_44 = arith.constant 24 : index
    %117 = vector.load %arg4[%c0_43, %c24_44] : memref<16x32xf32, #tpu.memory_space<vmem>>, vector<16x8xf32>
    tpu.vector_store %arg4[%c0_43, %c24_44], %116 {strides = array<i32>} : memref<16x32xf32, #tpu.memory_space<vmem>>, vector<16x8xf32>,
    %c0_45 = arith.constant 0 : index
    %c0_46 = arith.constant 0 : index
    %118 = vector.load %arg4[%c0_45, %c0_46] : memref<16x32xf32, #tpu.memory_space<vmem>>, vector<16x32xf32>
    %119 = vector.broadcast %68 : vector<1x32xf32> to vector<16x32xf32>
    %120 = arith.addf %118, %119 : vector<16x32xf32>
    %cst_47 = arith.constant 5.000000e-01 : f32
    %121 = vector.broadcast %cst_47 : f32 to vector<16x32xf32>
    %122 = arith.mulf %121, %120 : vector<16x32xf32>
    %123 = math.tanh %122 : vector<16x32xf32>
    %124 = math.exp %120 : vector<16x32xf32>
    %cst_48 = arith.constant 1.000000e+00 : f32
    %125 = vector.broadcast %cst_48 : f32 to vector<16x32xf32>
    %126 = arith.addf %124, %125 : vector<16x32xf32>
    %127 = arith.mulf %123, %126 : vector<16x32xf32>
    %cst_49 = arith.constant 0.000000e+00 : f32
    %128 = vector.broadcast %cst_49 : f32 to vector<16x32xf32>
    %129 = arith.cmpf ogt, %120, %128 : vector<16x32xf32>
    %130 = arith.select %129, %120, %127 : vector<16x32xi1>, vector<16x32xf32>
    %c56 = arith.constant 56 : index
    %c0_50 = arith.constant 0 : index
    %131 = vector.load %arg2[%c56, %c0_50] : memref<120x40xf32, #tpu.memory_space<vmem>>, vector<32x10xf32>
    %c88 = arith.constant 88 : index
    %c0_51 = arith.constant 0 : index
    %132 = vector.load %arg2[%c88, %c0_51] : memref<120x40xf32, #tpu.memory_space<vmem>>, vector<1x8xf32>
    %cst_52 = arith.constant dense<0.000000e+00> : vector<16x10xf32>
    %133 = tpu.matmul %130, %131, %cst_52 {dimension_numbers = #tpu.dot_dimension_numbers<[1], [0], [0], [1], [0, 0, 1, 1], [], []>} : vector<16x32xf32>, vector<32x10xf32>, vector<16x10xf32> -> vector<16x10xf32>
    %134 = vector.extract_strided_slice %133 {offsets = [0, 0], sizes = [16, 8], strides = [1, 1]} : vector<16x10xf32> to vector<16x8xf32>
    %135 = vector.extract_strided_slice %133 {offsets = [0, 8], sizes = [16, 2], strides = [1, 1]} : vector<16x10xf32> to vector<16x2xf32>
    %136 = tpu.transpose %135, [1, 0] : vector<16x2xf32> -> vector<2x16xf32>
    %137 = vector.extract_strided_slice %136 {offsets = [0, 0], sizes = [1, 16], strides = [1, 1]} : vector<2x16xf32> to vector<1x16xf32>
    %138 = vector.shape_cast %137 : vector<1x16xf32> to vector<1x16x1xf32>
    %139 = vector.extract_strided_slice %136 {offsets = [1, 0], sizes = [1, 16], strides = [1, 1]} : vector<2x16xf32> to vector<1x16xf32>
    %140 = vector.shape_cast %139 : vector<1x16xf32> to vector<1x1x16xf32>
    %141 = vector.broadcast %138 : vector<1x16x1xf32> to vector<1x16x16xf32>
    %142 = vector.broadcast %140 : vector<1x1x16xf32> to vector<1x16x16xf32>
    %143 = arith.addf %141, %142 : vector<1x16x16xf32>
    %cst_53 = arith.constant 0.000000e+00 : f32
    %144 = vector.broadcast %cst_53 : f32 to vector<1x16x16xf32>
    %145 = arith.cmpf ogt, %143, %144 : vector<1x16x16xf32>
    %cst_54 = arith.constant 2.000000e-01 : f32
    %146 = vector.broadcast %cst_54 : f32 to vector<1x16x16xf32>
    %147 = arith.mulf %146, %143 : vector<1x16x16xf32>
    %148 = arith.select %145, %143, %147 : vector<1x16x16xi1>, vector<1x16x16xf32>
    %149 = vector.shape_cast %2 : vector<16x16xf32> to vector<1x16x16xf32>
    %150 = arith.addf %148, %149 : vector<1x16x16xf32>
    %cst_55 = arith.constant dense<0xFF800000> : vector<1x16xf32>
    %151 = vector.multi_reduction <maximumf>, %150, %cst_55 [2] : vector<1x16x16xf32> to vector<1x16xf32>
    %152 = vector.shape_cast %151 : vector<1x16xf32> to vector<1x16x1xf32>
    %153 = vector.broadcast %152 : vector<1x16x1xf32> to vector<1x16x16xf32>
    %154 = arith.subf %150, %153 : vector<1x16x16xf32>
    %155 = math.exp %154 : vector<1x16x16xf32>
    %cst_56 = arith.constant dense<0.000000e+00> : vector<1x16xf32>
    %156 = vector.multi_reduction <add>, %155, %cst_56 [2] : vector<1x16x16xf32> to vector<1x16xf32>
    %157 = vector.shape_cast %156 : vector<1x16xf32> to vector<1x16x1xf32>
    %158 = tpu.reciprocal %157 {approx = true} : vector<1x16x1xf32> -> vector<1x16x1xf32>
    %159 = vector.broadcast %158 : vector<1x16x1xf32> to vector<1x16x16xf32>
    %160 = arith.mulf %155, %159 : vector<1x16x16xf32>
    %161 = vector.shape_cast %160 : vector<1x16x16xf32> to vector<16x16xf32>
    %cst_57 = arith.constant dense<0.000000e+00> : vector<16x8xf32>
    %162 = tpu.matmul %161, %134, %cst_57 {dimension_numbers = #tpu.dot_dimension_numbers<[1], [0], [0], [1], [0, 0, 1, 1], [], []>} : vector<16x16xf32>, vector<16x8xf32>, vector<16x8xf32> -> vector<16x8xf32>
    %c0_58 = arith.constant 0 : index
    %c0_59 = arith.constant 0 : index
    %163 = vector.load %arg4[%c0_58, %c0_59] : memref<16x32xf32, #tpu.memory_space<vmem>>, vector<16x8xf32>
    tpu.vector_store %arg4[%c0_58, %c0_59], %162 {strides = array<i32>} : memref<16x32xf32, #tpu.memory_space<vmem>>, vector<16x8xf32>,
    %c0_60 = arith.constant 0 : index
    %c0_61 = arith.constant 0 : index
    %164 = vector.load %arg4[%c0_60, %c0_61] : memref<16x32xf32, #tpu.memory_space<vmem>>, vector<16x8xf32>
    %165 = vector.broadcast %132 : vector<1x8xf32> to vector<16x8xf32>
    %166 = arith.addf %164, %165 : vector<16x8xf32>
    %cst_62 = arith.constant 5.000000e-01 : f32
    %167 = vector.broadcast %cst_62 : f32 to vector<16x8xf32>
    %168 = arith.mulf %167, %166 : vector<16x8xf32>
    %169 = math.tanh %168 : vector<16x8xf32>
    %170 = math.exp %166 : vector<16x8xf32>
    %cst_63 = arith.constant 1.000000e+00 : f32
    %171 = vector.broadcast %cst_63 : f32 to vector<16x8xf32>
    %172 = arith.addf %170, %171 : vector<16x8xf32>
    %173 = arith.mulf %169, %172 : vector<16x8xf32>
    %cst_64 = arith.constant 0.000000e+00 : f32
    %174 = vector.broadcast %cst_64 : f32 to vector<16x8xf32>
    %175 = arith.cmpf ogt, %166, %174 : vector<16x8xf32>
    %176 = arith.select %175, %166, %173 : vector<16x8xi1>, vector<16x8xf32>
    %177 = tpu.concatenate %176, %0 in 1 : vector<16x8xf32>, vector<16x8xf32> -> vector<16x16xf32>
    %c96 = arith.constant 96 : index
    %c0_65 = arith.constant 0 : index
    %178 = vector.load %arg2[%c96, %c0_65] : memref<120x40xf32, #tpu.memory_space<vmem>>, vector<16x4xf32>
    %cst_66 = arith.constant dense<0.000000e+00> : vector<16x4xf32>
    %179 = tpu.matmul %177, %178, %cst_66 {dimension_numbers = #tpu.dot_dimension_numbers<[1], [0], [0], [1], [0, 0, 1, 1], [], []>} : vector<16x16xf32>, vector<16x4xf32>, vector<16x4xf32> -> vector<16x4xf32>
    %c112 = arith.constant 112 : index
    %c0_67 = arith.constant 0 : index
    %180 = vector.load %arg2[%c112, %c0_67] : memref<120x40xf32, #tpu.memory_space<vmem>>, vector<1x4xf32>
    %181 = vector.broadcast %180 : vector<1x4xf32> to vector<16x4xf32>
    %182 = arith.addf %179, %181 : vector<16x4xf32>
    %c0_68 = arith.constant 0 : index
    %c0_69 = arith.constant 0 : index
    %183 = vector.load %arg3[%c0_68, %c0_69] : memref<16x4xf32, #tpu.memory_space<vmem>>, vector<16x4xf32>
    tpu.vector_store %arg3[%c0_68, %c0_69], %182 {strides = array<i32>} : memref<16x4xf32, #tpu.memory_space<vmem>>, vector<16x4xf32>,
    return
  }
}

</mosaic_0001>

<bundles_post_ra>
// kernel: tpu_custom_call.1
= control target key start
LH: loop header
LB: loop body
LE: loop exit
PB: predicated region body
PF: predicated region fallthrough
CT: control target
= control target key end

     0   :  { %vm22_vm0 = vcmask 64512   ;;  %s2269_s18 = smov 96   ;;  %v144_v9 = vlaneseq  ;;  %v2270_v20 = vmov 1966171168   ;;  %vm274_vm3 = vcmask 130048   ;;  %s2272_s21 = smov 104   ;;  %s2552_s2 = inlined_call_operand.vmem [shape: f32[120,40], index: 2, kind: input, shape index: {}]   ;;  %s2553_s0 = inlined_call_operand.vmem [shape: f32[16,8], index: 0, kind: input, shape index: {}]   ;;  %s2554_s1 = inlined_call_operand.vmem [shape: bf16[16,16], index: 1, kind: input, shape index: {}]   ;;  %s2555_s3 = inlined_call_operand.vmem [shape: f32[16,4], index: 3, kind: output, shape index: {}]  }
   0x1   :  { %v20_v0 = vld [vmem:[%s2552_s2] sm:$0xff]  ;;  %v15_v2 = vld [vmem:[%s2553_s0 + $0x8] sm:$0xff]  ;;  %v191_v21 = vunpack.c.l.s4 %v2270_v20  ;;  %s2273_s22 = smov 112   ;;  %s2274_s23 = smov 8   ;;  %vm541_vm10 = vcmask 130112   ;;  %vm639_vm11 = vcmask 195712  }
   0x2   :  { %v14_v1 = vld [vmem:[%s2553_s0] sm:$0xff]  ;;  %1979 = vmatprep.subr.mxu0 %v20_v0  ;;  %v2312_v10 = vshrl.u32 %v144_v9, 7  ;;  %s2275_s5 = smov 16   ;;  %s2276_s6 = smov 24   ;;  %vm737_vm12 = vcmask 261312   ;;  %vm769_vm13 = vcmask 261120  }
   0x3   :  { %1981 = vmatprep.mubr.msk.f32.mxu0 %vm22_vm0, %v14_v1  ;;  %1980 = vmatpush3.msra.mxu0 %v20_v0  ;;  %v192_v22 = vunpack.c.0.s8 %v191_v21  ;;  %v1921_v30 = vld [vmem:[%s2554_s1] sm:$0xff]   ;;  %s2271_s1 = smov 120  }
   0x4   :  { %1982 = vmatmul.mubr.msk.f32.vlgmr.msra.gmra.mrb[0].mxu0 %vm22_vm0, %v15_v2  ;;  %v2315_v11 = vsub.s32 0, %v2312_v10  ;;  %v2319_v14 = vsub.s32 1, %v2312_v10  ;;  %v168_v16 = vsub.s32 2, %v2312_v10  ;;  %v179_v18 = vsub.s32 3, %v2312_v10 }
   0x5   :  { %v2329_v24 = vsub.s32 %v192_v22, %v2312_v10  ;;  %v2339_v36 = vunpack.c.h.bf16 %v1921_v30  ;;  %v2341_v37 = vunpack.c.l.bf16 %v1921_v30 }
  0xd7   :  { %v1983_v3 = vpop.f32.mrb[0].mxu0 }
  0xd8   :  { %v95_v4 = vpop.f32.mrb[1].mxu0 }
  0xd9   :  { %106 = vrot.lane.b32.xlu0 %v95_v4, %s2269_s18  ;;  %v2076_v5 = vpack.c.bf16 %v1983_v3, %v95_v4  ;;  %v2309_v6 = vpack.i.bf16 %v1983_v3, %v95_v4 }
  0xdb   :  { %2077 = vmatprep.subr.bf16.mxu1 %v2076_v5 }
  0xdc   :  { %2079 = vmatpush3.bf16.msra.mxu1 %v2076_v5 }
  0xdd   :  { %108 = vrot.lane.b32.xlu0 %v1983_v3, %s2269_s18 }
 0x14b   :  { %v107_v7 = vpop.permute.xlu0 %106 }
 0x14c   :  { %112 = vxpose.xlu1.b32.start [1/2] (short) (narrow) %v107_v7, 8 }
 0x14f   :  { %v109_v8 = vpop.permute.xlu0 %108 }
 0x150   :  { %113 = vxpose.xlu1.b32.end [2/2] (short) (narrow) %v109_v8, 8 }
 0x1cc   :  { %v128_v12 = vpop.trf.xlu1 }
 0x1cd   :  { %v147_v13 = vrot.slane %v128_v12, %v2315_v11  ;;  %v158_v15 = vrot.slane %v128_v12, %v2319_v14  ;;  %v169_v17 = vrot.slane %v128_v12, %v168_v16  ;;  %v180_v19 = vrot.slane %v128_v12, %v179_v18 }
 0x1ce   :  { %v189_v23 = vcombine.high %v128_v12, %v128_v12 }
 0x1cf   :  { %153 = vbcast.lane.b32.xlu1 %v147_v13, 264  ;;  %149 = vbcast.lane.b32.xlu0 %v147_v13, 256 }
 0x1d0   :  { %v196_v25 = vrot.slane %v189_v23, %v2329_v24 }
 0x1d2   :  { %v197_v26 = vcombine.high %v196_v25, %v196_v25  ;;  %v204_v27 = vrot.slane %v196_v25, %v2329_v24 }
 0x1d3   :  { %160 = vbcast.lane.b32.xlu0 %v158_v15, 256 }
 0x1d4   :  { %v211_v28 = vrot.slane %v197_v26, %v2329_v24  ;;  %v217_v29 = vrot.slane %v204_v27, %v2315_v11  ;;  %v212_v47 = vcombine.high %v204_v27, %v204_v27 }
 0x1d6   :  { %v221_v35 = vrot.slane %v211_v28, %v2315_v11  ;;  %v225_v55 = vrot.slane %v212_v47, %v2315_v11  ;;  %v213_v62 = vcombine.high %v211_v28, %v211_v28 }
 0x1d7   :  { %164 = vbcast.lane.b32.xlu0 %v158_v15, 264 }
 0x1d8   :  { %v229_v5 = vrot.slane %v213_v62, %v2315_v11 }
 0x1db   :  { %171 = vbcast.lane.b32.xlu0 %v169_v17, 256 }
 0x1df   :  { %175 = vbcast.lane.b32.xlu0 %v169_v17, 264 }
 0x1e3   :  { %182 = vbcast.lane.b32.xlu0 %v180_v19, 256 }
 0x1e7   :  { %186 = vbcast.lane.b32.xlu0 %v180_v19, 264 }
 0x241   :  { %v154_v31 = vpop.permute.xlu1 %153  ;;  %v150_v32 = vpop.permute.xlu0 %149 }
 0x242   :  { %v235_v33 = vadd.f32 %v217_v29, %v154_v31  ;;  %v234_v34 = vadd.f32 %v217_v29, %v150_v32 }
 0x244   :  { %vm243_vm1 = vcmp.gt.f32.partialorder %v235_v33, 0.0  ;;  %v251_v38 = vmul.f32 0.2, %v235_v33  ;;  %vm242_vm2 = vcmp.gt.f32.partialorder %v234_v34, 0.0  ;;  %v250_v39 = vmul.f32 0.2, %v234_v34 }
 0x245   :  { %v161_v40 = vpop.permute.xlu0 %160 }
 0x246   :  { %v236_v41 = vadd.f32 %v221_v35, %v161_v40  ;;  %v259_v42 = vsel %vm243_vm1, %v235_v33, %v251_v38  ;;  %v258_v43 = vsel %vm242_vm2, %v234_v34, %v250_v39 }
 0x247   :  { %v267_v44 = vadd.f32 %v2339_v36, %v259_v42  ;;  %v266_v45 = vadd.f32 %v2341_v37, %v258_v43 }
 0x248   :  { %vm244_vm4 = vcmp.gt.f32.partialorder %v236_v41, 0.0  ;;  %v252_v46 = vmul.f32 0.2, %v236_v41 }
 0x249   :  { %v165_v48 = vpop.permute.xlu0 %164  ;;  %v278_v49 = vsel %vm274_vm3, %v267_v44, -inf  ;;  %v275_v50 = vsel %vm274_vm3, %v266_v45, -inf }
 0x24a   :  { %v237_v51 = vadd.f32 %v221_v35, %v165_v48  ;;  %279 = vmax.xlane.f32.xlu1 %v278_v49  ;;  %276 = vmax.xlane.f32.xlu0 %v275_v50  ;;  %v260_v52 = vsel %vm244_vm4, %v236_v41, %v252_v46 }
 0x24b   :  { %v268_v53 = vadd.f32 %v2341_v37, %v260_v52 }
 0x24c   :  { %vm245_vm5 = vcmp.gt.f32.partialorder %v237_v51, 0.0  ;;  %v253_v54 = vmul.f32 0.2, %v237_v51 }
 0x24d   :  { %v172_v56 = vpop.permute.xlu0 %171  ;;  %v281_v57 = vsel %vm274_vm3, %v268_v53, -inf }
 0x24e   :  { %v238_v58 = vadd.f32 %v225_v55, %v172_v56  ;;  %282 = vmax.xlane.f32.xlu0 %v281_v57  ;;  %v261_v59 = vsel %vm245_vm5, %v237_v51, %v253_v54 }
 0x24f   :  { %v269_v60 = vadd.f32 %v2339_v36, %v261_v59 }
 0x250   :  { %vm246_vm6 = vcmp.gt.f32.partialorder %v238_v58, 0.0  ;;  %v254_v61 = vmul.f32 0.2, %v238_v58 }
 0x251   :  { %v176_v63 = vpop.permute.xlu0 %175  ;;  %v284_v0 = vsel %vm274_vm3, %v269_v60, -inf }
 0x252   :  { %v239_v1 = vadd.f32 %v225_v55, %v176_v63  ;;  %285 = vmax.xlane.f32.xlu0 %v284_v0  ;;  %v262_v2 = vsel %vm246_vm6, %v238_v58, %v254_v61 }
 0x253   :  { %v270_v3 = vadd.f32 %v2341_v37, %v262_v2 }
 0x254   :  { %vm247_vm7 = vcmp.gt.f32.partialorder %v239_v1, 0.0  ;;  %v255_v4 = vmul.f32 0.2, %v239_v1 }
 0x255   :  { %v183_v7 = vpop.permute.xlu0 %182  ;;  %v287_v8 = vsel %vm274_vm3, %v270_v3, -inf }
 0x256   :  { %v240_v9 = vadd.f32 %v229_v5, %v183_v7  ;;  %288 = vmax.xlane.f32.xlu1 %v287_v8  ;;  %v263_v12 = vsel %vm247_vm7, %v239_v1, %v255_v4 }
 0x257   :  { %v271_v13 = vadd.f32 %v2339_v36, %v263_v12 }
 0x258   :  { %vm248_vm8 = vcmp.gt.f32.partialorder %v240_v9, 0.0  ;;  %v256_v15 = vmul.f32 0.2, %v240_v9 }
 0x259   :  { %v187_v17 = vpop.permute.xlu0 %186  ;;  %v290_v19 = vsel %vm274_vm3, %v271_v13, -inf }
 0x25a   :  { %v241_v20 = vadd.f32 %v229_v5, %v187_v17  ;;  %291 = vmax.xlane.f32.xlu0 %v290_v19  ;;  %v264_v21 = vsel %vm248_vm8, %v240_v9, %v256_v15 }
 0x25b   :  { %v272_v22 = vadd.f32 %v2341_v37, %v264_v21 }
 0x25c   :  { %vm249_vm9 = vcmp.gt.f32.partialorder %v241_v20, 0.0  ;;  %v257_v23 = vmul.f32 0.2, %v241_v20 }
 0x25d   :  { %v293_v25 = vsel %vm274_vm3, %v272_v22, -inf }
 0x25e   :  { %294 = vmax.xlane.f32.xlu1 %v293_v25  ;;  %v265_v26 = vsel %vm249_vm9, %v241_v20, %v257_v23 }
 0x25f   :  { %v273_v27 = vadd.f32 %v2339_v36, %v265_v26 }
 0x261   :  { %v296_v28 = vsel %vm274_vm3, %v273_v27, -inf }
 0x262   :  { %297 = vmax.xlane.f32.xlu0 %v296_v28 }
 0x26f   :  { %2142 = vrot.lane.b32.xlu1 %v2309_v6, %s2271_s1 }
 0x2d7   :  { %v280_v29 = vpop.xlane.xlu1 %279  ;;  %v277_v30 = vpop.xlane.xlu0 %276 }
 0x2d8   :  { %v300_v31 = vsub.f32 %v267_v44, %v280_v29  ;;  %v299_v32 = vsub.f32 %v266_v45, %v277_v30 }
 0x2da   :  { %v309_v33 = vmul.f32 1.442695, %v300_v31  ;;  %v307_v34 = vmul.f32 1.442695, %v299_v32 }
 0x2db   :  { %v283_v35 = vpop.xlane.xlu0 %282 }
 0x2dc   :  { %2171 = vpow2.f32 %v309_v33  ;;  %v301_v38 = vsub.f32 %v268_v53, %v283_v35 }
 0x2dd   :  { %2173 = vpow2.f32 %v307_v34 }
 0x2de   :  { %v311_v39 = vmul.f32 1.442695, %v301_v38 }
 0x2df   :  { %v286_v40 = vpop.xlane.xlu0 %285 }
 0x2e0   :  { %2175 = vpow2.f32 %v311_v39  ;;  %v302_v41 = vsub.f32 %v269_v60, %v286_v40 }
 0x2e2   :  { %v313_v42 = vmul.f32 1.442695, %v302_v41 }
 0x2e3   :  { %v289_v43 = vpop.xlane.xlu1 %288 }
 0x2e4   :  { %2177 = vpow2.f32 %v313_v42  ;;  %v303_v46 = vsub.f32 %v270_v3, %v289_v43 }
 0x2e6   :  { %v2172_v47 = vpop.eup %2171  ;;  %v315_v48 = vmul.f32 1.442695, %v303_v46 }
 0x2e7   :  { %v2174_v49 = vpop.eup %2173  ;;  %v292_v50 = vpop.xlane.xlu0 %291  ;;  %v326_v44 = vsel %vm274_vm3, %v2172_v47, 0.0 }
 0x2e8   :  { %2179 = vpow2.f32 %v315_v48  ;;  %v304_v45 = vsub.f32 %v271_v13, %v292_v50  ;;  %327 = vadd.xlane.f32.xlu0 %v326_v44  ;;  %v323_v51 = vsel %vm274_vm3, %v2174_v49, 0.0 }
 0x2e9   :  { %324 = vadd.xlane.f32.xlu1 %v323_v51 }
 0x2ea   :  { %v2176_v52 = vpop.eup %2175  ;;  %v317_v53 = vmul.f32 1.442695, %v304_v45 }
 0x2eb   :  { %v295_v54 = vpop.xlane.xlu1 %294  ;;  %v329_v55 = vsel %vm274_vm3, %v2176_v52, 0.0 }
 0x2ec   :  { %2181 = vpow2.f32 %v317_v53  ;;  %v305_v56 = vsub.f32 %v272_v22, %v295_v54 }
 0x2ed   :  { %330 = vadd.xlane.f32.xlu1 %v329_v55  ;;  %v764_v55 = vld [vmem:[%s2552_s2 + $0x10] sm:$0xff] }
 0x2ee   :  { %v2178_v57 = vpop.eup %2177  ;;  %v319_v58 = vmul.f32 1.442695, %v305_v56  ;;  %v765_v56 = vld [vmem:[%s2552_s2 + $0x18] sm:$0xff] }
 0x2ef   :  { %v2143_v59 = vpop.permute.xlu1 %2142  ;;  %v298_v60 = vpop.xlane.xlu0 %297  ;;  %v332_v61 = vsel %vm274_vm3, %v2178_v57, 0.0 }
 0x2f0   :  { %2183 = vpow2.f32 %v319_v58  ;;  %v2145_v62 = vunpack.i.h.bf16 %v2143_v59  ;;  %v2144_v63 = vunpack.i.l.bf16 %v2143_v59  ;;  %v306_v0 = vsub.f32 %v273_v27, %v298_v60  ;;  %333 = vadd.xlane.f32.xlu0 %v332_v61  ;;  %v767_v59 = vld [vmem:[%s2552_s2 + $0x28] sm:$0xff] }
 0x2f1   :  { %v2092_v58 = vpack.c.bf16 %v765_v56, %v764_v55 }
 0x2f2   :  { %v2180_v1 = vpop.eup %2179  ;;  %v2080_v2 = vpack.c.bf16 %v2145_v62, %v2144_v63  ;;  %v321_v3 = vmul.f32 1.442695, %v306_v0 }
 0x2f3   :  { %v335_v4 = vsel %vm274_vm3, %v2180_v1, 0.0 }
 0x2f4   :  { %2185 = vpow2.f32 %v321_v3  ;;  %2081 = vmatprep.subr.bf16.mxu0 %v2080_v2  ;;  %336 = vadd.xlane.f32.xlu1 %v335_v4 }
 0x2f5   :  { %2083 = vmatpush3.bf16.msra.mxu0 %v2080_v2 }
 0x2f6   :  { %v2182_v5 = vpop.eup %2181 }
 0x2f7   :  { %v338_v7 = vsel %vm274_vm3, %v2182_v5, 0.0 }
 0x2f8   :  { %339 = vadd.xlane.f32.xlu0 %v338_v7 }
 0x2fa   :  { %v2184_v8 = vpop.eup %2183 }
 0x2fb   :  { %v341_v9 = vsel %vm274_vm3, %v2184_v8, 0.0 }
 0x2fc   :  { %342 = vadd.xlane.f32.xlu1 %v341_v9 }
 0x2fe   :  { %v2186_v12 = vpop.eup %2185 }
 0x2ff   :  { %v344_v13 = vsel %vm274_vm3, %v2186_v12, 0.0 }
 0x300   :  { %345 = vadd.xlane.f32.xlu0 %v344_v13 }
 0x30d   :  { %2152 = vrot.lane.b32.xlu1 %v2309_v6, %s2272_s21 }
 0x316   :  { %2147 = vrot.lane.b32.xlu0 %v2309_v6, %s2273_s22 }
 0x375   :  { %v328_v15 = vpop.xlane.xlu0 %327 }
 0x376   :  { %v325_v17 = vpop.xlane.xlu1 %324  ;;  %2187 = vrcp.f32 %v328_v15 }
 0x377   :  { %2189 = vrcp.f32 %v325_v17 }
 0x37a   :  { %v331_v19 = vpop.xlane.xlu1 %330 }
 0x37b   :  { %2191 = vrcp.f32 %v331_v19 }
 0x37d   :  { %v334_v20 = vpop.xlane.xlu0 %333 }
 0x37e   :  { %2193 = vrcp.f32 %v334_v20 }
 0x380   :  { %v2188_v21 = vpop.eup %2187 }
 0x381   :  { %v2190_v22 = vpop.eup %2189  ;;  %v337_v23 = vpop.xlane.xlu1 %336  ;;  %v356_v25 = vmul.f32 %v2188_v21, %v2172_v47 }
 0x382   :  { %2195 = vrcp.f32 %v337_v23  ;;  %v355_v26 = vmul.f32 %v2190_v22, %v2174_v49 }
 0x384   :  { %1988 = vmatprep.mubr.msk.f32.mxu1 %vm274_vm3, %v355_v26 }
 0x385   :  { %v2192_v27 = vpop.eup %2191  ;;  %1989 = vmatmul.mubr.msk.f32.vlgmr.msra.gmra.mrb[0].mxu1 %vm274_vm3, %v356_v25  ;;  %v340_v29 = vpop.xlane.xlu0 %339 }
 0x386   :  { %v357_v6 = vmul.f32 %v2192_v27, %v2176_v52 }
 0x388   :  { %v2194_v28 = vpop.eup %2193  ;;  %1995 = vmatprep.mubr.msk.f32.mxu0 %vm274_vm3, %v357_v6 }
 0x389   :  { %v358_v30 = vmul.f32 %v2194_v28, %v2178_v57  ;;  %v343_v31 = vpop.xlane.xlu1 %342  ;;  %v766_v57 = vld [vmem:[%s2552_s2 + $0x20] sm:$0xff] }
 0x38a   :  { %2197 = vrcp.f32 %v343_v31  ;;  %v2096_v60 = vpack.c.bf16 %v767_v59, %v766_v57 }
 0x38b   :  { %2199 = vrcp.f32 %v340_v29  ;;  %1996 = vmatmul.mubr.msk.f32.vlgmr.msra.gmra.mrb[2].mxu0 %vm274_vm3, %v358_v30 }
 0x38c   :  { %v2196_v32 = vpop.eup %2195 }
 0x38d   :  { %v2153_v33 = vpop.permute.xlu1 %2152  ;;  %v346_v34 = vpop.xlane.xlu0 %345  ;;  %v359_v35 = vmul.f32 %v2196_v32, %v2180_v1 }
 0x38e   :  { %v2155_v38 = vunpack.i.h.bf16 %v2153_v33  ;;  %v2154_v39 = vunpack.i.l.bf16 %v2153_v33  ;;  %2201 = vrcp.f32 %v346_v34 }
 0x38f   :  { %2002 = vmatprep.mubr.msk.f32.mxu1 %vm274_vm3, %v359_v35 }
 0x390   :  { %v2088_v40 = vpack.c.bf16 %v2155_v38, %v2154_v39 }
 0x391   :  { %v2148_v41 = vpop.permute.xlu0 %2147 }
 0x392   :  { %v2150_v42 = vunpack.i.h.bf16 %v2148_v41  ;;  %v2149_v43 = vunpack.i.l.bf16 %v2148_v41  ;;  %2089 = vmatprep.subr.bf16.mxu0 %v2088_v40 }
 0x393   :  { %2091 = vmatpush3.bf16.msra.mxu0 %v2088_v40 }
 0x394   :  { %v2198_v46 = vpop.eup %2197  ;;  %v2084_v47 = vpack.c.bf16 %v2150_v42, %v2149_v43 }
 0x395   :  { %v2200_v48 = vpop.eup %2199  ;;  %v361_v49 = vmul.f32 %v2198_v46, %v2184_v8  ;;  %v1900_v8 = vld [vmem:[%s2552_s2 + $0x8] ss:$0 sm:$0xff] }
 0x396   :  { %2085 = vmatprep.subr.bf16.mxu1 %v2084_v47  ;;  %v360_v44 = vmul.f32 %v2200_v48, %v2182_v5 }
 0x397   :  { %2087 = vmatpush3.bf16.msra.mxu1 %v2084_v47  ;;  %2009 = vmatprep.mubr.msk.f32.mxu0 %vm274_vm3, %v361_v49 }
 0x398   :  { %v2202_v50 = vpop.eup %2201  ;;  %2093 = vmatprep.subr.bf16.mxu1 %v2092_v58 }
 0x399   :  { %v362_v45 = vmul.f32 %v2202_v50, %v2186_v12 }
 0x39a   :  { %2003 = vmatmul.mubr.msk.f32.vlgmr.msra.gmra.mrb[2].mxu1 %vm274_vm3, %v360_v44 }
 0x39b   :  { %2010 = vmatmul.mubr.msk.f32.vlgmr.msra.gmra.mrb[4].mxu0 %vm274_vm3, %v362_v45  ;;  %2095 = vmatpush3.bf16.msra.mxu1 %v2092_v58 }
 0x39c   :  { %2097 = vmatprep.subr.bf16.mxu1 %v2096_v60 }
 0x39f   :  { %2099 = vmatpush3.bf16.msra.mxu1 %v2096_v60 }
 0x458   :  { %v1990_v51 = vpop.f32.mrb[0].mxu1 }
 0x459   :  { %445 = vst.msk [vmem:[#allocation2 + $0x8] sm:$0xff] %vm22_vm0, %v1990_v51  ;;  %v435_v52 = vpop.f32.mrb[1].mxu1 }
 0x45a   :  { %444 = vst.msk [vmem:[#allocation2] sm:$0xff] %vm22_vm0, %v435_v52 }
 0x45e   :  { %v1997_v53 = vpop.f32.mrb[2].mxu0 }
 0x45f   :  { %537 = vrot.lane.b32.xlu0 %v1997_v53, %s2274_s23  ;;  %v524_v54 = vpop.f32.mrb[3].mxu0 }
 0x460   :  { %535 = vrot.lane.b32.xlu1 %v524_v54, %s2274_s23 }
 0x46d   :  { %v2004_v61 = vpop.f32.mrb[2].mxu1 }
 0x46e   :  { %v2011_v62 = vpop.f32.mrb[4].mxu0  ;;  %635 = vrot.lane.b32.xlu0 %v2004_v61, %s2275_s5  ;;  %v622_v63 = vpop.f32.mrb[3].mxu1 }
 0x46f   :  { %v720_v0 = vpop.f32.mrb[5].mxu0  ;;  %633 = vrot.lane.b32.xlu1 %v622_v63, %s2275_s5 }
 0x472   :  { %733 = vrot.lane.b32.xlu0 %v2011_v62, %s2276_s6 }
 0x473   :  { %731 = vrot.lane.b32.xlu1 %v720_v0, %s2276_s6 }
 0x4d1   :  { %v538_v1 = vpop.permute.xlu0 %537 }
 0x4d2   :  { %543 = vst.msk [vmem:[#allocation2 + $0x8] sm:$0xff] %vm541_vm10, %v538_v1  ;;  %v536_v2 = vpop.permute.xlu1 %535 }
 0x4d3   :  { %542 = vst.msk [vmem:[#allocation2] sm:$0xff] %vm541_vm10, %v536_v2 }
 0x4e0   :  { %v636_v3 = vpop.permute.xlu0 %635 }
 0x4e1   :  { %641 = vst.msk [vmem:[#allocation2 + $0x8] sm:$0xff] %vm639_vm11, %v636_v3  ;;  %v634_v4 = vpop.permute.xlu1 %633 }
 0x4e2   :  { %640 = vst.msk [vmem:[#allocation2] sm:$0xff] %vm639_vm11, %v634_v4 }
 0x4e4   :  { %v734_v5 = vpop.permute.xlu0 %733 }
 0x4e5   :  { %739 = vst.msk [vmem:[#allocation2 + $0x8] sm:$0xff] %vm737_vm12, %v734_v5  ;;  %v732_v7 = vpop.permute.xlu1 %731 }
 0x4e6   :  { %738 = vst.msk [vmem:[#allocation2] sm:$0xff] %vm737_vm12, %v732_v7 }
 0x4ec   :  { %v741_v9 = vld [vmem:[#allocation2 + $0x8] sm:$0xff] }
 0x4ed   :  { %v740_v12 = vld [vmem:[#allocation2] sm:$0xff]  ;;  %v747_v13 = vadd.f32 %v1900_v8, %v741_v9 }
 0x4ee   :  { %v746_v15 = vadd.f32 %v1900_v8, %v740_v12 }
 0x4ef   :  { %v754_v19 = vmul.f32 1.442695, %v747_v13  ;;  %v749_v21 = vmul.f32 0.5, %v747_v13  ;;  %vm761_vm15 = vcmp.gt.f32.partialorder %v747_v13, 0.0 }
 0x4f0   :  { %v752_v17 = vmul.f32 1.442695, %v746_v15  ;;  %v748_v20 = vmul.f32 0.5, %v746_v15  ;;  %vm760_vm14 = vcmp.gt.f32.partialorder %v746_v15, 0.0 }
 0x4f2   :  { %2203 = vpow2.f32 %v752_v17 }
 0x4f3   :  { %2205 = vpow2.f32 %v754_v19 }
 0x4f4   :  { %2207 = vtanh.f32 %v748_v20 }
 0x4f5   :  { %2209 = vtanh.f32 %v749_v21 }
 0x4fc   :  { %v2204_v22 = vpop.eup %2203 }
 0x4fd   :  { %v2206_v23 = vpop.eup %2205  ;;  %v756_v25 = vadd.f32 1.0, %v2204_v22 }
 0x4fe   :  { %v2208_v26 = vpop.eup %2207  ;;  %v757_v27 = vadd.f32 1.0, %v2206_v23 }
 0x4ff   :  { %v2210_v6 = vpop.eup %2209  ;;  %v758_v28 = vmul.f32 %v2208_v26, %v756_v25 }
 0x500   :  { %v759_v29 = vmul.f32 %v2210_v6, %v757_v27 }
 0x501   :  { %v762_v30 = vsel %vm760_vm14, %v746_v15, %v758_v28 }
 0x502   :  { %2020 = vmatprep.mubr.msk.f32.mxu1 %vm769_vm13, %v762_v30  ;;  %v763_v31 = vsel %vm761_vm15, %v747_v13, %v759_v29 }
 0x503   :  { %2021 = vmatmul.mubr.msk.f32.vlgmr.msra.gmra.mrb[4].mxu1 %vm769_vm13, %v763_v31 }
 0x5d6   :  { %v2022_v32 = vpop.f32.mrb[4].mxu1 }
 0x5d7   :  { %855 = vrot.lane.b32.xlu0 %v2022_v32, %s2269_s18  ;;  %v842_v33 = vpop.f32.mrb[5].mxu1 }
 0x5d8   :  { %853 = vrot.lane.b32.xlu1 %v842_v33, %s2269_s18  ;;  %v2100_v34 = vpack.c.bf16 %v2022_v32, %v842_v33  ;;  %v2416_v35 = vpack.i.bf16 %v2022_v32, %v842_v33 }
 0x5da   :  { %2101 = vmatprep.subr.bf16.mxu0 %v2100_v34 }
 0x5db   :  { %2103 = vmatpush3.bf16.msra.mxu0 %v2100_v34 }
 0x649   :  { %v856_v39 = vpop.permute.xlu0 %855 }
 0x64a   :  { %v854_v38 = vpop.permute.xlu1 %853 }
 0x64b   :  { %859 = vxpose.xlu1.b32.start [1/2] (short) (narrow) %v854_v38, 8 }
 0x64f   :  { %860 = vxpose.xlu1.b32.end [2/2] (short) (narrow) %v856_v39, 8 }
 0x6cb   :  { %v875_v40 = vpop.trf.xlu1 }
 0x6cc   :  { %v894_v41 = vrot.slane %v875_v40, %v2315_v11  ;;  %v905_v42 = vrot.slane %v875_v40, %v2319_v14  ;;  %v916_v43 = vrot.slane %v875_v40, %v168_v16  ;;  %v927_v46 = vrot.slane %v875_v40, %v179_v18 }
 0x6cd   :  { %v936_v47 = vcombine.high %v875_v40, %v875_v40 }
 0x6ce   :  { %896 = vbcast.lane.b32.xlu0 %v894_v41, 256 }
 0x6cf   :  { %v943_v48 = vrot.slane %v936_v47, %v2329_v24 }
 0x6d1   :  { %v951_v49 = vrot.slane %v943_v48, %v2329_v24  ;;  %v944_v44 = vcombine.high %v943_v48, %v943_v48 }
 0x6d2   :  { %900 = vbcast.lane.b32.xlu0 %v894_v41, 264 }
 0x6d3   :  { %v964_v50 = vrot.slane %v951_v49, %v2315_v11  ;;  %v958_v16 = vrot.slane %v944_v44, %v2329_v24  ;;  %v959_v62 = vcombine.high %v951_v49, %v951_v49 }
 0x6d5   :  { %v968_v56 = vrot.slane %v958_v16, %v2315_v11  ;;  %v972_v5 = vrot.slane %v959_v62, %v2315_v11  ;;  %v960_v17 = vcombine.high %v958_v16, %v958_v16 }
 0x6d6   :  { %907 = vbcast.lane.b32.xlu0 %v905_v42, 256 }
 0x6d7   :  { %v976_v26 = vrot.slane %v960_v17, %v2315_v11 }
 0x6da   :  { %911 = vbcast.lane.b32.xlu0 %v905_v42, 264 }
 0x6de   :  { %918 = vbcast.lane.b32.xlu0 %v916_v43, 256 }
 0x6e2   :  { %922 = vbcast.lane.b32.xlu0 %v916_v43, 264 }
 0x6e6   :  { %929 = vbcast.lane.b32.xlu0 %v927_v46, 256 }
 0x6ea   :  { %933 = vbcast.lane.b32.xlu0 %v927_v46, 264 }
 0x740   :  { %v897_v45 = vpop.permute.xlu0 %896 }
 0x741   :  { %v981_v51 = vadd.f32 %v964_v50, %v897_v45 }
 0x743   :  { %vm989_vm1 = vcmp.gt.f32.partialorder %v981_v51, 0.0  ;;  %v997_v52 = vmul.f32 0.2, %v981_v51 }
 0x744   :  { %v901_v53 = vpop.permute.xlu0 %900 }
 0x745   :  { %v982_v54 = vadd.f32 %v964_v50, %v901_v53  ;;  %v1005_v10 = vsel %vm989_vm1, %v981_v51, %v997_v52  ;;  %vm1883_vm1 = vcmask 31744  }
 0x746   :  { %v2429_v18 = vadd.f32 %v2341_v37, %v1005_v10 }
 0x747   :  { %vm990_vm2 = vcmp.gt.f32.partialorder %v982_v54, 0.0  ;;  %v998_v55 = vmul.f32 0.2, %v982_v54 }
 0x748   :  { %v908_v57 = vpop.permute.xlu0 %907  ;;  %v1021_v58 = vsel %vm274_vm3, %v2429_v18, -inf }
 0x749   :  { %v983_v59 = vadd.f32 %v968_v56, %v908_v57  ;;  %1022 = vmax.xlane.f32.xlu0 %v1021_v58  ;;  %v1006_v60 = vsel %vm990_vm2, %v982_v54, %v998_v55 }
 0x74a   :  { %v1014_v61 = vadd.f32 %v2339_v36, %v1006_v60 }
 0x74b   :  { %vm991_vm4 = vcmp.gt.f32.partialorder %v983_v59, 0.0  ;;  %v999_v24 = vmul.f32 0.2, %v983_v59 }
 0x74c   :  { %v912_v63 = vpop.permute.xlu0 %911  ;;  %v1024_v0 = vsel %vm274_vm3, %v1014_v61, -inf }
 0x74d   :  { %v984_v1 = vadd.f32 %v968_v56, %v912_v63  ;;  %1025 = vmax.xlane.f32.xlu1 %v1024_v0  ;;  %v1007_v2 = vsel %vm991_vm4, %v983_v59, %v999_v24 }
 0x74e   :  { %v1015_v3 = vadd.f32 %v2341_v37, %v1007_v2 }
 0x74f   :  { %vm992_vm5 = vcmp.gt.f32.partialorder %v984_v1, 0.0  ;;  %v1000_v4 = vmul.f32 0.2, %v984_v1 }
 0x750   :  { %v919_v7 = vpop.permute.xlu0 %918  ;;  %v1027_v8 = vsel %vm274_vm3, %v1015_v3, -inf }
 0x751   :  { %v985_v9 = vadd.f32 %v972_v5, %v919_v7  ;;  %1028 = vmax.xlane.f32.xlu0 %v1027_v8  ;;  %v1008_v12 = vsel %vm992_vm5, %v984_v1, %v1000_v4 }
 0x752   :  { %v1016_v13 = vadd.f32 %v2339_v36, %v1008_v12 }
 0x753   :  { %vm993_vm6 = vcmp.gt.f32.partialorder %v985_v9, 0.0  ;;  %v1001_v15 = vmul.f32 0.2, %v985_v9 }
 0x754   :  { %v923_v19 = vpop.permute.xlu0 %922  ;;  %v1030_v20 = vsel %vm274_vm3, %v1016_v13, -inf }
 0x755   :  { %v986_v21 = vadd.f32 %v972_v5, %v923_v19  ;;  %1031 = vmax.xlane.f32.xlu0 %v1030_v20  ;;  %v1009_v22 = vsel %vm993_vm6, %v985_v9, %v1001_v15 }
 0x756   :  { %v1017_v23 = vadd.f32 %v2341_v37, %v1009_v22 }
 0x757   :  { %vm994_vm7 = vcmp.gt.f32.partialorder %v986_v21, 0.0  ;;  %v1002_v25 = vmul.f32 0.2, %v986_v21 }
 0x758   :  { %v930_v27 = vpop.permute.xlu0 %929  ;;  %v1033_v6 = vsel %vm274_vm3, %v1017_v23, -inf }
 0x759   :  { %v987_v28 = vadd.f32 %v976_v26, %v930_v27  ;;  %1034 = vmax.xlane.f32.xlu0 %v1033_v6  ;;  %v1010_v29 = vsel %vm994_vm7, %v986_v21, %v1002_v25 }
 0x75a   :  { %v1018_v30 = vadd.f32 %v2339_v36, %v1010_v29 }
 0x75b   :  { %vm995_vm8 = vcmp.gt.f32.partialorder %v987_v28, 0.0  ;;  %v1003_v31 = vmul.f32 0.2, %v987_v28 }
 0x75c   :  { %v934_v32 = vpop.permute.xlu0 %933  ;;  %v1036_v33 = vsel %vm274_vm3, %v1018_v30, -inf }
 0x75d   :  { %v988_v34 = vadd.f32 %v976_v26, %v934_v32  ;;  %1037 = vmax.xlane.f32.xlu0 %v1036_v33  ;;  %v1011_v38 = vsel %vm995_vm8, %v987_v28, %v1003_v31 }
 0x75e   :  { %v1019_v39 = vadd.f32 %v2341_v37, %v1011_v38 }
 0x75f   :  { %vm996_vm9 = vcmp.gt.f32.partialorder %v988_v34, 0.0  ;;  %v1004_v40 = vmul.f32 0.2, %v988_v34 }
 0x760   :  { %v1039_v41 = vsel %vm274_vm3, %v1019_v39, -inf }
 0x761   :  { %1040 = vmax.xlane.f32.xlu0 %v1039_v41  ;;  %v1012_v42 = vsel %vm996_vm9, %v988_v34, %v1004_v40 }
 0x762   :  { %v1020_v43 = vadd.f32 %v2339_v36, %v1012_v42 }
 0x764   :  { %v1042_v46 = vsel %vm274_vm3, %v1020_v43, -inf }
 0x765   :  { %1043 = vmax.xlane.f32.xlu1 %v1042_v46 }
 0x7d6   :  { %v1023_v47 = vpop.xlane.xlu0 %1022 }
 0x7d7   :  { %v1045_v48 = vsub.f32 %v2429_v18, %v1023_v47 }
 0x7d9   :  { %v1053_v49 = vmul.f32 1.442695, %v1045_v48 }
 0x7da   :  { %v1026_v50 = vpop.xlane.xlu1 %1025 }
 0x7db   :  { %2211 = vpow2.f32 %v1053_v49  ;;  %v1046_v44 = vsub.f32 %v1014_v61, %v1026_v50 }
 0x7dd   :  { %v1055_v45 = vmul.f32 1.442695, %v1046_v44 }
 0x7de   :  { %v1029_v51 = vpop.xlane.xlu0 %1028 }
 0x7df   :  { %2213 = vpow2.f32 %v1055_v45  ;;  %v1047_v52 = vsub.f32 %v1015_v3, %v1029_v51 }
 0x7e1   :  { %v1057_v16 = vmul.f32 1.442695, %v1047_v52 }
 0x7e2   :  { %v1032_v53 = vpop.xlane.xlu0 %1031 }
 0x7e3   :  { %2215 = vpow2.f32 %v1057_v16  ;;  %v1048_v54 = vsub.f32 %v1016_v13, %v1032_v53 }
 0x7e5   :  { %v2212_v10 = vpop.eup %2211  ;;  %v1059_v55 = vmul.f32 1.442695, %v1048_v54 }
 0x7e6   :  { %v1035_v56 = vpop.xlane.xlu0 %1034  ;;  %v1069_v57 = vsel %vm274_vm3, %v2212_v10, 0.0 }
 0x7e7   :  { %2217 = vpow2.f32 %v1059_v55  ;;  %v1049_v58 = vsub.f32 %v1017_v23, %v1035_v56  ;;  %1070 = vadd.xlane.f32.xlu0 %v1069_v57 }
 0x7e9   :  { %v2214_v18 = vpop.eup %2213  ;;  %v1061_v59 = vmul.f32 1.442695, %v1049_v58 }
 0x7ea   :  { %v1038_v60 = vpop.xlane.xlu0 %1037  ;;  %v1072_v61 = vsel %vm274_vm3, %v2214_v18, 0.0 }
 0x7eb   :  { %2219 = vpow2.f32 %v1061_v59  ;;  %v1050_v24 = vsub.f32 %v1018_v30, %v1038_v60  ;;  %1073 = vadd.xlane.f32.xlu1 %v1072_v61 }
 0x7ed   :  { %v2216_v62 = vpop.eup %2215  ;;  %v1063_v63 = vmul.f32 1.442695, %v1050_v24 }
 0x7ee   :  { %v1041_v0 = vpop.xlane.xlu0 %1040  ;;  %v1075_v1 = vsel %vm274_vm3, %v2216_v62, 0.0 }
 0x7ef   :  { %2221 = vpow2.f32 %v1063_v63  ;;  %v1051_v2 = vsub.f32 %v1019_v39, %v1041_v0  ;;  %1076 = vadd.xlane.f32.xlu0 %v1075_v1  ;;  %v1507_v63 = vld [vmem:[%s2552_s2 + $0x38] sm:$0xff]  ;;  %v1508_v0 = vld [vmem:[%s2552_s2 + $0x40] sm:$0xff]  ;;  %v1509_v1 = vld [vmem:[%s2552_s2 + $0x48] sm:$0xff] }
 0x7f1   :  { %v2454_v3 = vpop.eup %2217  ;;  %v1065_v4 = vmul.f32 1.442695, %v1051_v2  ;;  %v2116_v2 = vpack.c.bf16 %v1508_v0, %v1507_v63  ;;  %v2268_v63 = vld [vmem:[%s2553_s0 + $0x8] sm:$0xff] }
 0x7f2   :  { %v1078_v5 = vsel %vm274_vm3, %v2454_v3, 0.0  ;;  %v1044_v17 = vpop.xlane.xlu1 %1043 }
 0x7f3   :  { %2223 = vpow2.f32 %v1065_v4  ;;  %1079 = vadd.xlane.f32.xlu1 %v1078_v5  ;;  %v1052_v19 = vsub.f32 %v1020_v43, %v1044_v17 }
 0x7f5   :  { %v2220_v7 = vpop.eup %2219  ;;  %v1067_v20 = vmul.f32 1.442695, %v1052_v19  ;;  %v1911_v19 = vld [vmem:[%s2552_s2 + $0x30] ss:$0 sm:$0xff] }
 0x7f6   :  { %v1081_v8 = vsel %vm274_vm3, %v2220_v7, 0.0 }
 0x7f7   :  { %1082 = vadd.xlane.f32.xlu0 %v1081_v8  ;;  %2225 = vpow2.f32 %v1067_v20 }
 0x7f9   :  { %v2222_v9 = vpop.eup %2221 }
 0x7fa   :  { %v1084_v12 = vsel %vm274_vm3, %v2222_v9, 0.0 }
 0x7fb   :  { %1085 = vadd.xlane.f32.xlu1 %v1084_v12 }
 0x7fd   :  { %v2224_v13 = vpop.eup %2223 }
 0x7fe   :  { %v1087_v15 = vsel %vm274_vm3, %v2224_v13, 0.0 }
 0x7ff   :  { %1088 = vadd.xlane.f32.xlu0 %v1087_v15 }
 0x801   :  { %v2226_v21 = vpop.eup %2225 }
 0x802   :  { %v1090_v22 = vsel %vm274_vm3, %v2226_v21, 0.0 }
 0x80c   :  { %2162 = vrot.lane.b32.xlu1 %v2416_v35, %s2273_s22 }
 0x815   :  { %2157 = vrot.lane.b32.xlu0 %v2416_v35, %s2271_s1 }
 0x830   :  { %1091 = vadd.xlane.f32.xlu1 %v1090_v22 }
 0x841   :  { %2167 = vrot.lane.b32.xlu1 %v2416_v35, %s2272_s21 }
 0x874   :  { %v1071_v23 = vpop.xlane.xlu0 %1070 }
 0x875   :  { %2227 = vrcp.f32 %v1071_v23 }
 0x878   :  { %v1074_v25 = vpop.xlane.xlu1 %1073 }
 0x879   :  { %2229 = vrcp.f32 %v1074_v25 }
 0x87c   :  { %v1077_v26 = vpop.xlane.xlu0 %1076 }
 0x87d   :  { %2231 = vrcp.f32 %v1077_v26 }
 0x87f   :  { %v2228_v27 = vpop.eup %2227 }
 0x880   :  { %v1101_v6 = vmul.f32 %v2228_v27, %v2212_v10  ;;  %v1080_v30 = vpop.xlane.xlu1 %1079 }
 0x882   :  { %2027 = vmatprep.mubr.msk.f32.mxu0 %vm274_vm3, %v1101_v6 }
 0x883   :  { %v2230_v28 = vpop.eup %2229 }
 0x884   :  { %v1102_v29 = vmul.f32 %v2230_v28, %v2214_v18  ;;  %v1083_v31 = vpop.xlane.xlu0 %1082 }
 0x885   :  { %2233 = vrcp.f32 %v1083_v31 }
 0x886   :  { %2028 = vmatmul.mubr.msk.f32.vlgmr.msra.gmra.mrb[6].mxu0 %vm274_vm3, %v1102_v29 }
 0x887   :  { %v2232_v32 = vpop.eup %2231 }
 0x888   :  { %v1086_v33 = vpop.xlane.xlu1 %1085  ;;  %v1103_v35 = vmul.f32 %v2232_v32, %v2216_v62 }
 0x889   :  { %2235 = vrcp.f32 %v1086_v33 }
 0x88a   :  { %2237 = vrcp.f32 %v1080_v30  ;;  %2034 = vmatprep.mubr.msk.f32.mxu0 %vm274_vm3, %v1103_v35 }
 0x88c   :  { %v2163_v34 = vpop.permute.xlu1 %2162  ;;  %v1089_v38 = vpop.xlane.xlu0 %1088 }
 0x88d   :  { %v2165_v39 = vunpack.i.h.bf16 %v2163_v34  ;;  %v2164_v40 = vunpack.i.l.bf16 %v2163_v34  ;;  %2239 = vrcp.f32 %v1089_v38 }
 0x88f   :  { %v2234_v41 = vpop.eup %2233  ;;  %v2108_v42 = vpack.c.bf16 %v2165_v39, %v2164_v40 }
 0x890   :  { %v2158_v43 = vpop.permute.xlu0 %2157  ;;  %v1105_v46 = vmul.f32 %v2234_v41, %v2220_v7 }
 0x891   :  { %v2160_v47 = vunpack.i.h.bf16 %v2158_v43  ;;  %v2159_v48 = vunpack.i.l.bf16 %v2158_v43  ;;  %2109 = vmatprep.subr.bf16.mxu1 %v2108_v42 }
 0x892   :  { %2111 = vmatpush3.bf16.msra.mxu1 %v2108_v42  ;;  %2041 = vmatprep.mubr.msk.f32.mxu1 %vm274_vm3, %v1105_v46 }
 0x893   :  { %v2236_v49 = vpop.eup %2235  ;;  %v2104_v50 = vpack.c.bf16 %v2160_v47, %v2159_v48  ;;  %2117 = vmatprep.subr.bf16.mxu1 %v2116_v2 }
 0x894   :  { %v2238_v44 = vpop.eup %2237  ;;  %v1106_v45 = vmul.f32 %v2236_v49, %v2222_v9 }
 0x895   :  { %2105 = vmatprep.subr.bf16.mxu0 %v2104_v50  ;;  %v1104_v52 = vmul.f32 %v2238_v44, %v2454_v3  ;;  %v1510_v3 = vld [vmem:[%s2552_s2 + $0x50] sm:$0xff] }
 0x896   :  { %2107 = vmatpush3.bf16.msra.mxu0 %v2104_v50  ;;  %2042 = vmatmul.mubr.msk.f32.vlgmr.msra.gmra.mrb[6].mxu1 %vm274_vm3, %v1106_v45  ;;  %v2120_v4 = vpack.c.bf16 %v1510_v3, %v1509_v1 }
 0x897   :  { %v2240_v51 = vpop.eup %2239  ;;  %2119 = vmatpush3.bf16.msra.mxu1 %v2116_v2 }
 0x898   :  { %v1107_v16 = vmul.f32 %v2240_v51, %v2224_v13  ;;  %2121 = vmatprep.subr.bf16.mxu1 %v2120_v4 }
 0x899   :  { %2035 = vmatmul.mubr.msk.f32.vlgmr.msra.gmra.mrb[8].mxu0 %vm274_vm3, %v1104_v52 }
 0x89a   :  { %2048 = vmatprep.mubr.msk.f32.mxu0 %vm274_vm3, %v1107_v16 }
 0x89b   :  { %2123 = vmatpush3.bf16.msra.mxu1 %v2120_v4 }
 0x8bd   :  { %v1092_v53 = vpop.xlane.xlu1 %1091 }
 0x8be   :  { %2241 = vrcp.f32 %v1092_v53 }
 0x8c1   :  { %v2168_v54 = vpop.permute.xlu1 %2167 }
 0x8c2   :  { %v2170_v10 = vunpack.i.h.bf16 %v2168_v54  ;;  %v2169_v55 = vunpack.i.l.bf16 %v2168_v54 }
 0x8c4   :  { %v2112_v56 = vpack.c.bf16 %v2170_v10, %v2169_v55 }
 0x8c6   :  { %2113 = vmatprep.subr.bf16.mxu0 %v2112_v56 }
 0x8c7   :  { %2115 = vmatpush3.bf16.msra.mxu0 %v2112_v56 }
 0x8c8   :  { %v2242_v57 = vpop.eup %2241 }
 0x8c9   :  { %v1108_v58 = vmul.f32 %v2242_v57, %v2226_v21 }
 0x8cb   :  { %2049 = vmatmul.mubr.msk.f32.vlgmr.msra.gmra.mrb[10].mxu0 %vm274_vm3, %v1108_v58 }
 0x959   :  { %v2029_v18 = vpop.f32.mrb[6].mxu0 }
 0x95a   :  { %1191 = vst.msk [vmem:[#allocation2 + $0x8] sm:$0xff] %vm22_vm0, %v2029_v18  ;;  %v1181_v59 = vpop.f32.mrb[7].mxu0 }
 0x95b   :  { %1190 = vst.msk [vmem:[#allocation2] sm:$0xff] %vm22_vm0, %v1181_v59 }
 0x969   :  { %v2043_v60 = vpop.f32.mrb[6].mxu1 }
 0x96a   :  { %1380 = vrot.lane.b32.xlu1 %v2043_v60, %s2275_s5  ;;  %v1367_v61 = vpop.f32.mrb[7].mxu1 }
 0x96b   :  { %1378 = vrot.lane.b32.xlu0 %v1367_v61, %s2275_s5 }
 0x96c   :  { %v2036_v24 = vpop.f32.mrb[8].mxu0 }
 0x96d   :  { %v1270_v62 = vpop.f32.mrb[9].mxu0 }
 0x96e   :  { %1283 = vrot.lane.b32.xlu1 %v2036_v24, %s2274_s23 }
 0x96f   :  { %1281 = vrot.lane.b32.xlu0 %v1270_v62, %s2274_s23 }
 0x99e   :  { %v2050_v5 = vpop.f32.mrb[10].mxu0 }
 0x99f   :  { %1477 = vrot.lane.b32.xlu1 %v2050_v5, %s2276_s6  ;;  %v1464_v7 = vpop.f32.mrb[11].mxu0 }
 0x9a0   :  { %1475 = vrot.lane.b32.xlu0 %v1464_v7, %s2276_s6  ;;  %v1795_v7 = vld [vmem:[%s2552_s2 + $0x60] sm:$0xff] }
 0x9dc   :  { %v1381_v8 = vpop.permute.xlu1 %1380 }
 0x9dd   :  { %v1379_v9 = vpop.permute.xlu0 %1378 }
 0x9e0   :  { %v1284_v12 = vpop.permute.xlu1 %1283 }
 0x9e1   :  { %1288 = vst.msk [vmem:[#allocation2 + $0x8] sm:$0xff] %vm541_vm10, %v1284_v12  ;;  %v1282_v13 = vpop.permute.xlu0 %1281 }
 0x9e2   :  { %1385 = vst.msk [vmem:[#allocation2 + $0x8] sm:$0xff] %vm639_vm11, %v1381_v8  ;;  %v1796_v8 = vld [vmem:[%s2552_s2 + $0x68] sm:$0xff] }
 0x9e3   :  { %1287 = vst.msk [vmem:[#allocation2] sm:$0xff] %vm541_vm10, %v1282_v13 }
 0x9e4   :  { %1384 = vst.msk [vmem:[#allocation2] sm:$0xff] %vm639_vm11, %v1379_v9  ;;  %v2128_v9 = vpack.c.bf16 %v1796_v8, %v1795_v7 }
 0xa11   :  { %v1478_v15 = vpop.permute.xlu1 %1477 }
 0xa12   :  { %1482 = vst.msk [vmem:[#allocation2 + $0x8] sm:$0xff] %vm737_vm12, %v1478_v15  ;;  %v1476_v17 = vpop.permute.xlu0 %1475  ;;  %v1916_v15 = vld [vmem:[%s2552_s2 + $0x58] ss:$0 sm:$0xff] }
 0xa13   :  { %1481 = vst.msk [vmem:[#allocation2] sm:$0xff] %vm737_vm12, %v1476_v17 }
 0xa19   :  { %v1484_v20 = vld [vmem:[#allocation2 + $0x8] sm:$0xff] }
 0xa1a   :  { %v1483_v21 = vld [vmem:[#allocation2] sm:$0xff]  ;;  %v1490_v22 = vadd.f32 %v1911_v19, %v1484_v20 }
 0xa1b   :  { %v1489_v23 = vadd.f32 %v1911_v19, %v1483_v21 }
 0xa1c   :  { %v1497_v26 = vmul.f32 1.442695, %v1490_v22  ;;  %v1492_v6 = vmul.f32 0.5, %v1490_v22  ;;  %vm1504_vm11 = vcmp.gt.f32.partialorder %v1490_v22, 0.0 }
 0xa1d   :  { %v1495_v25 = vmul.f32 1.442695, %v1489_v23  ;;  %v1491_v27 = vmul.f32 0.5, %v1489_v23  ;;  %vm1503_vm10 = vcmp.gt.f32.partialorder %v1489_v23, 0.0 }
 0xa1f   :  { %2243 = vpow2.f32 %v1495_v25 }
 0xa20   :  { %2245 = vpow2.f32 %v1497_v26 }
 0xa21   :  { %2247 = vtanh.f32 %v1491_v27 }
 0xa22   :  { %2249 = vtanh.f32 %v1492_v6 }
 0xa29   :  { %v2244_v28 = vpop.eup %2243 }
 0xa2a   :  { %v2246_v29 = vpop.eup %2245  ;;  %v1499_v30 = vadd.f32 1.0, %v2244_v28 }
 0xa2b   :  { %v2248_v31 = vpop.eup %2247  ;;  %v1500_v32 = vadd.f32 1.0, %v2246_v29 }
 0xa2c   :  { %v2250_v33 = vpop.eup %2249  ;;  %v1501_v35 = vmul.f32 %v2248_v31, %v1499_v30 }
 0xa2d   :  { %v1502_v34 = vmul.f32 %v2250_v33, %v1500_v32 }
 0xa2e   :  { %v1505_v38 = vsel %vm1503_vm10, %v1489_v23, %v1501_v35 }
 0xa2f   :  { %2059 = vmatprep.mubr.msk.f32.mxu1 %vm769_vm13, %v1505_v38  ;;  %v1506_v39 = vsel %vm1504_vm11, %v1490_v22, %v1502_v34 }
 0xa30   :  { %2060 = vmatmul.mubr.msk.f32.vlgmr.msra.gmra.mrb[8].mxu1 %vm769_vm13, %v1506_v39 }
 0xb03   :  { %v2061_v40 = vpop.f32.mrb[8].mxu1 }
 0xb04   :  { %1597 = vrot.lane.b32.xlu1 %v2061_v40, %s2271_s1  ;;  %v1584_v41 = vpop.f32.mrb[9].mxu1 }
 0xb05   :  { %v2124_v42 = vpack.c.bf16 %v2061_v40, %v1584_v41  ;;  %1595 = vrot.lane.b32.xlu0 %v1584_v41, %s2271_s1 }
 0xb07   :  { %2125 = vmatprep.subr.bf16.mxu0 %v2124_v42 }
 0xb08   :  { %2127 = vmatpush3.bf16.msra.mxu0 %v2124_v42  ;;  %v1917_v42 = vld [vmem:[%s2552_s2 + $0x70] ss:$0 sm:$0xff] }
 0xb09   :  { %2129 = vmatprep.subr.bf16.mxu0 %v2128_v9 }
 0xb76   :  { %v1598_v46 = vpop.permute.xlu1 %1597 }
 0xb77   :  { %v1596_v43 = vpop.permute.xlu0 %1595 }
 0xb78   :  { %1601 = vxpose.xlu0.b32.start [1/2] (short) (narrow) %v1596_v43, 8 }
 0xb7c   :  { %1602 = vxpose.xlu0.b32.end [2/2] (short) (narrow) %v1598_v46, 8 }
 0xbf8   :  { %v1617_v47 = vpop.trf.xlu0 }
 0xbf9   :  { %v1636_v48 = vrot.slane %v1617_v47, %v2315_v11  ;;  %v1647_v49 = vrot.slane %v1617_v47, %v2319_v14 }
 0xbfb   :  { %1638 = vbcast.lane.b32.xlu1 %v1636_v48, 256 }
 0xbff   :  { %1642 = vbcast.lane.b32.xlu1 %v1636_v48, 264 }
 0xc6d   :  { %v1639_v50 = vpop.permute.xlu1 %1638 }
 0xc6e   :  { %v1648_v44 = vadd.f32 %v1647_v49, %v1639_v50 }
 0xc70   :  { %vm1650_vm12 = vcmp.gt.f32.partialorder %v1648_v44, 0.0  ;;  %v1652_v45 = vmul.f32 0.2, %v1648_v44 }
 0xc71   :  { %v1643_v51 = vpop.permute.xlu1 %1642 }
 0xc72   :  { %v1649_v52 = vadd.f32 %v1647_v49, %v1643_v51  ;;  %v1654_v16 = vsel %vm1650_vm12, %v1648_v44, %v1652_v45 }
 0xc73   :  { %v1656_v53 = vadd.f32 %v2341_v37, %v1654_v16 }
 0xc74   :  { %vm1651_vm13 = vcmp.gt.f32.partialorder %v1649_v52, 0.0  ;;  %v1653_v54 = vmul.f32 0.2, %v1649_v52 }
 0xc75   :  { %v1658_v10 = vsel %vm274_vm3, %v1656_v53, -inf }
 0xc76   :  { %1659 = vmax.xlane.f32.xlu1 %v1658_v10  ;;  %v1655_v55 = vsel %vm1651_vm13, %v1649_v52, %v1653_v54 }
 0xc77   :  { %v1657_v11 = vadd.f32 %v2339_v36, %v1655_v55  ;;  %v2267_v36 = vld [vmem:[%s2553_s0] sm:$0xff] }
 0xc79   :  { %v1661_v56 = vsel %vm274_vm3, %v1657_v11, -inf }
 0xc7a   :  { %1662 = vmax.xlane.f32.xlu0 %v1661_v56 }
 0xd03   :  { %v1660_v14 = vpop.xlane.xlu1 %1659 }
 0xd04   :  { %v1664_v57 = vsub.f32 %v1656_v53, %v1660_v14 }
 0xd06   :  { %v1666_v58 = vmul.f32 1.442695, %v1664_v57 }
 0xd07   :  { %v1663_v18 = vpop.xlane.xlu0 %1662 }
 0xd08   :  { %2251 = vpow2.f32 %v1666_v58  ;;  %v1665_v59 = vsub.f32 %v1657_v11, %v1663_v18 }
 0xd0a   :  { %v1668_v60 = vmul.f32 1.442695, %v1665_v59 }
 0xd0c   :  { %2253 = vpow2.f32 %v1668_v60 }
 0xd12   :  { %v2252_v37 = vpop.eup %2251 }
 0xd13   :  { %v1670_v61 = vsel %vm274_vm3, %v2252_v37, 0.0 }
 0xd14   :  { %1671 = vadd.xlane.f32.xlu1 %v1670_v61 }
 0xd16   :  { %v2254_v24 = vpop.eup %2253 }
 0xd17   :  { %v1673_v62 = vsel %vm274_vm3, %v2254_v24, 0.0 }
 0xd18   :  { %1674 = vadd.xlane.f32.xlu1 %v1673_v62 }
 0xd29   :  { %1787 = vrot.lane.b32.xlu1 %v2267_v36, %s2274_s23 }
 0xd2d   :  { %1789 = vrot.lane.b32.xlu1 %v2268_v63, %s2274_s23 }
 0xda1   :  { %v1672_v0 = vpop.xlane.xlu1 %1671 }
 0xda2   :  { %2255 = vrcp.f32 %v1672_v0 }
 0xda5   :  { %v1675_v1 = vpop.xlane.xlu1 %1674 }
 0xda6   :  { %2257 = vrcp.f32 %v1675_v1 }
 0xda9   :  { %v1788_v27 = vpop.permute.xlu1 %1787 }
 0xdac   :  { %v2256_v2 = vpop.eup %2255 }
 0xdad   :  { %v1678_v3 = vmul.f32 %v2256_v2, %v2252_v37  ;;  %v1790_v35 = vpop.permute.xlu1 %1789 }
 0xdaf   :  { %2066 = vmatprep.mubr.msk.f32.mxu0 %vm274_vm3, %v1678_v3 }
 0xdb0   :  { %v2258_v4 = vpop.eup %2257 }
 0xdb1   :  { %v1679_v5 = vmul.f32 %v2258_v4, %v2254_v24 }
 0xdb3   :  { %2067 = vmatmul.mubr.msk.f32.vlgmr.msra.gmra.mrb[12].mxu0 %vm274_vm3, %v1679_v5 }
 0xdb4   :  { %2131 = vmatpush3.bf16.msra.mxu0 %v2128_v9 }
 0xe86   :  { %v2068_v12 = vpop.f32.mrb[12].mxu0 }
 0xe87   :  { %1762 = vst.msk [vmem:[#allocation2 + $0x8] sm:$0xff] %vm22_vm0, %v2068_v12  ;;  %v1752_v13 = vpop.f32.mrb[13].mxu0 }
 0xe88   :  { %1761 = vst.msk [vmem:[#allocation2] sm:$0xff] %vm22_vm0, %v1752_v13 }
 0xe8e   :  { %v1764_v17 = vld [vmem:[#allocation2 + $0x8] sm:$0xff] }
 0xe8f   :  { %v1763_v19 = vld [vmem:[#allocation2] sm:$0xff]  ;;  %v1770_v20 = vadd.f32 %v1916_v15, %v1764_v17 }
 0xe90   :  { %v1769_v21 = vadd.f32 %v1916_v15, %v1763_v19 }
 0xe91   :  { %v1777_v23 = vmul.f32 1.442695, %v1770_v20  ;;  %v1772_v26 = vmul.f32 0.5, %v1770_v20  ;;  %vm1784_vm15 = vcmp.gt.f32.partialorder %v1770_v20, 0.0 }
 0xe92   :  { %v1775_v22 = vmul.f32 1.442695, %v1769_v21  ;;  %v1771_v25 = vmul.f32 0.5, %v1769_v21  ;;  %vm1783_vm14 = vcmp.gt.f32.partialorder %v1769_v21, 0.0 }
 0xe94   :  { %2259 = vpow2.f32 %v1775_v22 }
 0xe95   :  { %2261 = vpow2.f32 %v1777_v23 }
 0xe96   :  { %2263 = vtanh.f32 %v1771_v25 }
 0xe97   :  { %2265 = vtanh.f32 %v1772_v26 }
 0xe9e   :  { %v2260_v6 = vpop.eup %2259 }
 0xe9f   :  { %v2262_v28 = vpop.eup %2261  ;;  %v1779_v29 = vadd.f32 1.0, %v2260_v6 }
 0xea0   :  { %v2264_v30 = vpop.eup %2263  ;;  %v1780_v31 = vadd.f32 1.0, %v2262_v28 }
 0xea1   :  { %v2266_v32 = vpop.eup %2265  ;;  %v1781_v33 = vmul.f32 %v2264_v30, %v1779_v29 }
 0xea2   :  { %v1782_v34 = vmul.f32 %v2266_v32, %v1780_v31 }
 0xea3   :  { %v1785_v38 = vsel %vm1783_vm14, %v1769_v21, %v1781_v33 }
 0xea4   :  { %v1793_v39 = vsel %vm22_vm0, %v1785_v38, %v1788_v27  ;;  %v1786_v40 = vsel %vm1784_vm15, %v1770_v20, %v1782_v34 }
 0xea5   :  { %v1794_v41 = vsel %vm22_vm0, %v1786_v40, %v1790_v35  ;;  %2073 = vmatprep.mubr.msk.f32.mxu0 %vm274_vm3, %v1793_v39 }
 0xea6   :  { %2074 = vmatmul.mubr.msk.f32.vlgmr.msra.gmra.mrb[14].mxu0 %vm274_vm3, %v1794_v41 }
 0xf79   :  { %v2075_v43 = vpop.f32.mrb[14].mxu0 }
 0xf7a   :  { %v1880_v46 = vadd.f32 %v2075_v43, %v1917_v42  ;;  %v1874_v47 = vpop.f32.mrb[15].mxu0 }
 0xf7b   :  { %v1875_v48 = vadd.f32 %v1917_v42, %v1874_v47 }
 0xf7c   :  { %1885 = vst.msk [vmem:[%s2555_s3 + $0x8] sm:$0xff] %vm1883_vm1, %v1880_v46 }
 0xf7d   :  { %1884 = vst.msk [vmem:[%s2555_s3] sm:$0xff] %vm1883_vm1, %v1875_v48 }

</bundles_post_ra>
